<compile_context>
chip_gen: v5e
topology: v5e:2x2
jax: 0.10.0
libtpu: 0.0.40
codegen_flags: <defaults>
</compile_context>

<pallas_src>
import jax
import jax.numpy as jnp
from jax import lax
from jax.experimental import pallas as pl
from jax.experimental.pallas import tpu as pltpu

# ----------------------------- configuration --------------------------------
VOCAB = 64
EMBED = 16                 # encoder embedding dim
E2 = 2 * EMBED             # decoder embedding dim == attention embed_dim == hidden
NUM_HEADS = 4
HEAD_DIM = E2 // NUM_HEADS
ENC_HID = E2
DEC_HID = E2
BATCH = 2
SEQ = 8
TARGET_LEN = 6
SOS = 1
SCALE = float(HEAD_DIM) ** (-0.5)
F32 = jnp.float32

H = ENC_HID                # 32
GATES = 4 * H              # 128

# --------------------- fused 128-lane weight-slab row offsets ----------------
R_TOK = 0                   # (VOCAB, 4H)  enc_embedding @ enc_w_ih.T + enc_b
R_EHH = R_TOK + VOCAB       # (H, 4H)      enc_w_hh.T
R_DXH = R_EHH + H           # (E2, 4H)     dec_w_ih[:, :E2].T   (embed part)
R_DCH = R_DXH + E2          # (H, 4H)      dec_w_ih[:, E2:].T   (context part)
R_DHH = R_DCH + H           # (H, 4H)      dec_w_hh.T
R_KVF = R_DHH + H           # (H, 4H)      [wk.T*SCALE | wv.T | fc_w.T]
R_BD = R_KVF + H            # (1, 4H)      dec_b_ih + dec_b_hh
R_BKVF = R_BD + 1           # (1, 4H)      [bk*SCALE | bv | fc_b]
W_ROWS = R_BKVF + 1         # 226


# ------------------------------- the kernel ---------------------------------
def seq2seq_kernel(
    tok_ref,   # (S*B, 1)   int32  token ids, time-major rows (s, b)
    w_ref,     # (226, 4H)  f32    fused 128-lane weight slab (layout above)
    aux_ref,   # (35, 2*E2) f32    [wq.T|head_ones] ; [sos_emb|bq] ; [sel|0]
    out_ref,   # (T*B, V)   f32    time-major logits rows (t, b)
):
    def lstm_step(gates, c):
        # full-(B,4H)-vreg transcendental passes, gates sliced from the results
        sg = jax.nn.sigmoid(gates)
        tg = jnp.tanh(gates)
        i = sg[:, 0 * H:1 * H]
        f = sg[:, 1 * H:2 * H]
        o = sg[:, 3 * H:4 * H]
        g = tg[:, 2 * H:3 * H]
        c = f * c + i * g
        h = o * jnp.tanh(c)
        return h, c

    # ---- encoder embedding gather + input projection (one fused matmul) -----
    tok = tok_ref[...]                                              # (S*B, 1) i32
    lanes = lax.broadcasted_iota(jnp.int32, (SEQ * BATCH, VOCAB), 1)
    one_hot = (tok == lanes).astype(F32)                            # (S*B, V)
    tok_w = w_ref[pl.ds(R_TOK, VOCAB), :]                           # (V, 4H)
    xg_all = jnp.dot(one_hot, tok_w, preferred_element_type=F32)    # (S*B, 4H) +bias

    # ---- encoder LSTM (unrolled; only h @ w_hh on the serial chain) ---------
    w_hh_e = w_ref[pl.ds(R_EHH, H), :]                              # (H, 4H)
    h = jnp.zeros((BATCH, H), F32)
    c = jnp.zeros((BATCH, H), F32)
    enc_h = []
    for s in range(SEQ):
        gates = xg_all[s * BATCH:(s + 1) * BATCH, :] + jnp.dot(
            h, w_hh_e, preferred_element_type=F32)
        h, c = lstm_step(gates, c)
        enc_h.append(h)
    h_enc, c_enc = h, c
    enc_h_all = jnp.concatenate(enc_h, axis=0)                      # (S*B, H)

    # ---- multi-head cross attention (batch-vectorized, hoisted) -------------
    blk = aux_ref[pl.ds(0, E2), :]                                  # (E2, 2*E2)
    wq_t = blk[:, :E2]                                              # (E2, E2)
    head_ones = blk[:, E2:]                                         # (E2, E2)
    row = aux_ref[pl.ds(E2, 1), :]                                  # (1, 2*E2)
    dec_emb = row[:, :E2]                                           # (1, E2)  SOS
    bq = row[:, E2:]                                                # (1, E2)
    sel = aux_ref[pl.ds(E2 + 1, BATCH), pl.ds(0, SEQ * BATCH)]      # (B, S*B)

    q = jnp.dot(dec_emb, wq_t, preferred_element_type=F32) + bq     # (1, E2)

    kvf = w_ref[pl.ds(R_KVF, H), :]                                 # (H, 4H)
    brow = w_ref[pl.ds(R_BKVF, 1), :]                               # (1, 4H)
    w_kv = kvf[:, :2 * E2]                                          # (H, 2*E2)
    w_fc = kvf[:, 2 * E2:]                                          # (H, V)
    b_kv = brow[:, :2 * E2]                                         # (1, 2*E2)
    b_fc = brow[:, 2 * E2:]                                         # (1, V)

    kv = jnp.dot(enc_h_all, w_kv, preferred_element_type=F32) + b_kv  # (S*B, 2*E2)
    k = kv[:, :E2]                                                  # SCALE folded in
    v = kv[:, E2:]

    # per-head scores replicated across the head's lanes
    sc = jnp.dot(q * k, head_ones, preferred_element_type=F32)      # (S*B, E2)
    sc = sc - jnp.max(sc, axis=0, keepdims=True)                    # shift-invariant
    e = jnp.exp(sc)
    # per-batch softmax reduction over s via one selector matmul
    red = jnp.dot(sel, jnp.concatenate([e * v, e], axis=1),
                  preferred_element_type=F32)                       # (B, 2*E2)
    context = red[:, :E2] / red[:, E2:]                             # (B, E2)

    # ---- decoder LSTM (unrolled; constant input contribution hoisted) -------
    w_xh_d = w_ref[pl.ds(R_DXH, E2), :]                             # (E2, 4H)
    w_ch_d = w_ref[pl.ds(R_DCH, H), :]                              # (H, 4H)
    w_hh_d = w_ref[pl.ds(R_DHH, H), :]                              # (H, 4H)
    b_dec = w_ref[pl.ds(R_BD, 1), :]                                # (1, 4H)
    x_gates = (jnp.dot(dec_emb, w_xh_d, preferred_element_type=F32) + b_dec
               + jnp.dot(context, w_ch_d, preferred_element_type=F32))  # (B, 4H)

    h, c = h_enc, c_enc
    dec_h = []
    for _ in range(1, TARGET_LEN):
        gates = x_gates + jnp.dot(h, w_hh_d, preferred_element_type=F32)
        h, c = lstm_step(gates, c)
        dec_h.append(h)

    # ---- fc_out off the recurrence + single full-block aligned store --------
    h_cat = jnp.concatenate(dec_h, axis=0)                          # ((T-1)*B, H)
    logits = jnp.dot(h_cat, w_fc, preferred_element_type=F32) + b_fc
    out_ref[...] = jnp.concatenate(
        [jnp.zeros((BATCH, VOCAB), F32), logits], axis=0)           # (T*B, V)


# ------------------------------- wrapper -------------------------------------
@jax.jit
def seq2seq_forward(params, inputs):
    # token ids, time-major rows (s, b)
    tok_tm = inputs.astype(jnp.int32).T.reshape(SEQ * BATCH, 1)

    # fused encoder token projection: table @ W_ih^T + (b_ih + b_hh)
    enc_b = (params["enc_b_ih"] + params["enc_b_hh"]).reshape(1, -1)
    tok_w = jnp.matmul(params["enc_embedding"], params["enc_w_ih"].T,
                       precision=jax.lax.Precision.HIGHEST) + enc_b    # (V, 4H)

    kvf = jnp.concatenate([params["wk"].T * SCALE, params["wv"].T,
                           params["fc_w"].T], axis=1)                  # (H, 4H)
    b_dec = (params["dec_b_ih"] + params["dec_b_hh"]).reshape(1, -1)   # (1, 4H)
    b_kvf = jnp.concatenate([params["bk"] * SCALE, params["bv"],
                             params["fc_b"]]).reshape(1, -1)           # (1, 4H)
    w128 = jnp.concatenate([
        tok_w,                                                          # 64 rows
        params["enc_w_hh"].T,                                           # 32
        params["dec_w_ih"][:, :E2].T,                                   # 32
        params["dec_w_ih"][:, E2:].T,                                   # 32
        params["dec_w_hh"].T,                                           # 32
        kvf,                                                            # 32
        b_dec,                                                          # 1
        b_kvf,                                                          # 1
    ], axis=0).astype(F32)                                              # (226, 128)

    # aux slab: [wq.T | head_ones] ; [sos_embed | bq] ; [batch selector | 0]
    head_ones = (jnp.arange(E2)[:, None] // HEAD_DIM
                 == jnp.arange(E2)[None, :] // HEAD_DIM).astype(F32)    # (E2, E2)
    sel = (jnp.arange(SEQ * BATCH)[None, :] % BATCH
           == jnp.arange(BATCH)[:, None]).astype(F32)                   # (B, S*B)
    dec_emb = params["dec_embedding"][SOS].reshape(1, E2)
    top = jnp.concatenate([params["wq"].T, head_ones], axis=1)          # (E2, 2*E2)
    mid = jnp.concatenate([dec_emb, params["bq"].reshape(1, E2)], axis=1)
    bot = jnp.concatenate(
        [sel, jnp.zeros((BATCH, 2 * E2 - SEQ * BATCH), F32)], axis=1)
    aux = jnp.concatenate([top, mid, bot], axis=0).astype(F32)          # (35, 64)

    vmem = pl.BlockSpec(memory_space=pltpu.MemorySpace.VMEM)
    out = pl.pallas_call(
        seq2seq_kernel,
        out_shape=jax.ShapeDtypeStruct((TARGET_LEN * BATCH, VOCAB), F32),
        in_specs=[vmem, vmem, vmem],
        out_specs=vmem,
    )(tok_tm, w128, aux)
    # (T*B, V) time-major -> (B, T, V)
    return jnp.transpose(out.reshape(TARGET_LEN, BATCH, VOCAB), (1, 0, 2))


# --------------------------- deterministic params ----------------------------
def init_params(key):
    keys = jax.random.split(key, 18)
    norm = lambda k, s: (0.1 * jax.random.normal(k, s)).astype(F32)
    p = {}
    p["enc_embedding"] = norm(keys[0], (VOCAB, EMBED))
    p["enc_w_ih"] = norm(keys[1], (4 * ENC_HID, EMBED))
    p["enc_w_hh"] = norm(keys[2], (4 * ENC_HID, ENC_HID))
    p["enc_b_ih"] = norm(keys[3], (4 * ENC_HID,))
    p["enc_b_hh"] = norm(keys[4], (4 * ENC_HID,))
    p["dec_embedding"] = norm(keys[5], (VOCAB, E2))
    p["wq"], p["bq"] = norm(keys[6], (E2, E2)), norm(keys[7], (E2,))
    p["wk"], p["bk"] = norm(keys[8], (E2, E2)), norm(keys[9], (E2,))
    p["wv"], p["bv"] = norm(keys[10], (E2, E2)), norm(keys[11], (E2,))
    p["dec_w_ih"] = norm(keys[12], (4 * DEC_HID, E2 + DEC_HID))
    p["dec_w_hh"] = norm(keys[13], (4 * DEC_HID, DEC_HID))
    p["dec_b_ih"] = norm(keys[14], (4 * DEC_HID,))
    p["dec_b_hh"] = norm(keys[15], (4 * DEC_HID,))
    p["fc_w"] = norm(keys[16], (VOCAB, DEC_HID))
    p["fc_b"] = norm(keys[17], (VOCAB,))
    return p


# ------------------------ pure-JAX reference (PyTorch semantics) --------------
def reference_forward(p, inputs):
    B, S = inputs.shape

    def cell(x, h, c, w_ih, w_hh, b_ih, b_hh):
        gates = x @ w_ih.T + h @ w_hh.T + b_ih + b_hh
        i = jax.nn.sigmoid(gates[:, 0 * H:1 * H])
        f = jax.nn.sigmoid(gates[:, 1 * H:2 * H])
        g = jnp.tanh(gates[:, 2 * H:3 * H])
        o = jax.nn.sigmoid(gates[:, 3 * H:4 * H])
        c = f * c + i * g
        h = o * jnp.tanh(c)
        return h, c

    emb = p["enc_embedding"][inputs]
    h = jnp.zeros((B, H), F32)
    c = jnp.zeros((B, H), F32)
    enc_outs = []
    for s in range(S):
        h, c = cell(emb[:, s, :], h, c, p["enc_w_ih"], p["enc_w_hh"],
                    p["enc_b_ih"], p["enc_b_hh"])
        enc_outs.append(h)
    enc_outputs = jnp.stack(enc_outs, axis=1)                          # (B, S, H)

    dec_tok = jnp.full((B, 1), SOS, jnp.int32)
    outputs = jnp.zeros((B, TARGET_LEN, VOCAB), F32)
    for t in range(1, TARGET_LEN):
        embedded = p["dec_embedding"][dec_tok]                         # (B, 1, E2)
        Q = embedded @ p["wq"].T + p["bq"]
        K = enc_outputs @ p["wk"].T + p["bk"]
        V = enc_outputs @ p["wv"].T + p["bv"]
        Qh = Q.reshape(B, 1, NUM_HEADS, HEAD_DIM).transpose(0, 2, 1, 3)
        Kh = K.reshape(B, S, NUM_HEADS, HEAD_DIM).transpose(0, 2, 1, 3)
        Vh = V.reshape(B, S, NUM_HEADS, HEAD_DIM).transpose(0, 2, 1, 3)
        scores = jnp.einsum("bhqd,bhkd->bhqk", Qh, Kh) * SCALE
        attnw = jax.nn.softmax(scores, axis=-1)
        ctx = jnp.einsum("bhqk,bhkd->bhqd", attnw, Vh)
        ctx = ctx.transpose(0, 2, 1, 3).reshape(B, 1, E2)
        lstm_in = jnp.concatenate([embedded, ctx], axis=2)[:, 0, :]
        h, c = cell(lstm_in, h, c, p["dec_w_ih"], p["dec_w_hh"],
                    p["dec_b_ih"], p["dec_b_hh"])
        logits = h @ p["fc_w"].T + p["fc_b"]
        outputs = outputs.at[:, t, :].set(logits)
    return outputs


if __name__ == "__main__":
    key = jax.random.PRNGKey(0)
    pkey, ikey = jax.random.split(key)
    params = init_params(pkey)
    inputs = jax.random.randint(ikey, (BATCH, SEQ), 0, VOCAB, dtype=jnp.int32)

    out = seq2seq_forward(params, inputs)
    out = jax.block_until_ready(out)
    assert out.shape == (BATCH, TARGET_LEN, VOCAB), out.shape

    ref = reference_forward(params, inputs)
    assert bool(jnp.all(jnp.isfinite(out)))
    assert bool(jnp.allclose(out, ref, atol=2e-2, rtol=2e-2)), (
        float(jnp.max(jnp.abs(out - ref))))

    print("KERNEL_OK")
</pallas_src>

<mosaic_0001>
module attributes {stable_mosaic.version = 11 : i64} {
  func.func @seq2seq_kernel(%arg0: memref<16x1xi32, #tpu.memory_space<vmem>>, %arg1: memref<226x128xf32, #tpu.memory_space<vmem>>, %arg2: memref<35x64xf32, #tpu.memory_space<vmem>>, %arg3: memref<12x64xf32, #tpu.memory_space<vmem>>) attributes {dimension_semantics = [], scalar_prefetch = 0 : i64, scratch_operands = 0 : i64, tpu.core_type = #tpu.core_type<tc>} {
    %c0 = arith.constant 0 : index
    %c0_0 = arith.constant 0 : index
    %0 = vector.load %arg0[%c0, %c0_0] : memref<16x1xi32, #tpu.memory_space<vmem>>, vector<16x1xi32>
    %1 = tpu.iota {dimensions = array<i32: 1>} : vector<16x64xi32>
    %2 = vector.broadcast %0 : vector<16x1xi32> to vector<16x64xi32>
    %3 = arith.cmpi eq, %2, %1 : vector<16x64xi32>
    %4 = arith.extui %3 : vector<16x64xi1> to vector<16x64xi32>
    %5 = arith.sitofp %4 : vector<16x64xi32> to vector<16x64xf32>
    %c0_1 = arith.constant 0 : index
    %c0_2 = arith.constant 0 : index
    %6 = vector.load %arg1[%c0_1, %c0_2] : memref<226x128xf32, #tpu.memory_space<vmem>>, vector<64x128xf32>
    %cst = arith.constant dense<0.000000e+00> : vector<16x128xf32>
    %7 = tpu.matmul %5, %6, %cst {dimension_numbers = #tpu.dot_dimension_numbers<[1], [0], [0], [1], [0, 0, 1, 1], [], []>} : vector<16x64xf32>, vector<64x128xf32>, vector<16x128xf32> -> vector<16x128xf32>
    %c64 = arith.constant 64 : index
    %c0_3 = arith.constant 0 : index
    %8 = vector.load %arg1[%c64, %c0_3] : memref<226x128xf32, #tpu.memory_space<vmem>>, vector<32x128xf32>
    %cst_4 = arith.constant 0.000000e+00 : f32
    %9 = vector.broadcast %cst_4 : f32 to vector<2x32xf32>
    %cst_5 = arith.constant 0.000000e+00 : f32
    %10 = vector.broadcast %cst_5 : f32 to vector<2x32xf32>
    %11 = vector.extract_strided_slice %7 {offsets = [0, 0], sizes = [2, 128], strides = [1, 1]} : vector<16x128xf32> to vector<2x128xf32>
    %cst_6 = arith.constant dense<0.000000e+00> : vector<2x128xf32>
    %12 = tpu.matmul %9, %8, %cst_6 {dimension_numbers = #tpu.dot_dimension_numbers<[1], [0], [0], [1], [0, 0, 1, 1], [], []>} : vector<2x32xf32>, vector<32x128xf32>, vector<2x128xf32> -> vector<2x128xf32>
    %13 = arith.addf %11, %12 : vector<2x128xf32>
    %14 = arith.negf %13 : vector<2x128xf32>
    %15 = math.exp %14 : vector<2x128xf32>
    %cst_7 = arith.constant 1.000000e+00 : f32
    %16 = vector.broadcast %cst_7 : f32 to vector<2x128xf32>
    %17 = arith.addf %16, %15 : vector<2x128xf32>
    %18 = arith.divf %16, %17 : vector<2x128xf32>
    %19 = math.tanh %13 : vector<2x128xf32>
    %20 = vector.extract_strided_slice %18 {offsets = [0, 0], sizes = [2, 32], strides = [1, 1]} : vector<2x128xf32> to vector<2x32xf32>
    %21 = vector.extract_strided_slice %18 {offsets = [0, 32], sizes = [2, 32], strides = [1, 1]} : vector<2x128xf32> to vector<2x32xf32>
    %22 = vector.extract_strided_slice %18 {offsets = [0, 96], sizes = [2, 32], strides = [1, 1]} : vector<2x128xf32> to vector<2x32xf32>
    %23 = vector.extract_strided_slice %19 {offsets = [0, 64], sizes = [2, 32], strides = [1, 1]} : vector<2x128xf32> to vector<2x32xf32>
    %24 = arith.mulf %21, %10 : vector<2x32xf32>
    %25 = arith.mulf %20, %23 : vector<2x32xf32>
    %26 = arith.addf %24, %25 : vector<2x32xf32>
    %27 = math.tanh %26 : vector<2x32xf32>
    %28 = arith.mulf %22, %27 : vector<2x32xf32>
    %29 = vector.extract_strided_slice %7 {offsets = [2, 0], sizes = [2, 128], strides = [1, 1]} : vector<16x128xf32> to vector<2x128xf32>
    %cst_8 = arith.constant dense<0.000000e+00> : vector<2x128xf32>
    %30 = tpu.matmul %28, %8, %cst_8 {dimension_numbers = #tpu.dot_dimension_numbers<[1], [0], [0], [1], [0, 0, 1, 1], [], []>} : vector<2x32xf32>, vector<32x128xf32>, vector<2x128xf32> -> vector<2x128xf32>
    %31 = arith.addf %29, %30 : vector<2x128xf32>
    %32 = arith.negf %31 : vector<2x128xf32>
    %33 = math.exp %32 : vector<2x128xf32>
    %cst_9 = arith.constant 1.000000e+00 : f32
    %34 = vector.broadcast %cst_9 : f32 to vector<2x128xf32>
    %35 = arith.addf %34, %33 : vector<2x128xf32>
    %36 = arith.divf %34, %35 : vector<2x128xf32>
    %37 = math.tanh %31 : vector<2x128xf32>
    %38 = vector.extract_strided_slice %36 {offsets = [0, 0], sizes = [2, 32], strides = [1, 1]} : vector<2x128xf32> to vector<2x32xf32>
    %39 = vector.extract_strided_slice %36 {offsets = [0, 32], sizes = [2, 32], strides = [1, 1]} : vector<2x128xf32> to vector<2x32xf32>
    %40 = vector.extract_strided_slice %36 {offsets = [0, 96], sizes = [2, 32], strides = [1, 1]} : vector<2x128xf32> to vector<2x32xf32>
    %41 = vector.extract_strided_slice %37 {offsets = [0, 64], sizes = [2, 32], strides = [1, 1]} : vector<2x128xf32> to vector<2x32xf32>
    %42 = arith.mulf %39, %26 : vector<2x32xf32>
    %43 = arith.mulf %38, %41 : vector<2x32xf32>
    %44 = arith.addf %42, %43 : vector<2x32xf32>
    %45 = math.tanh %44 : vector<2x32xf32>
    %46 = arith.mulf %40, %45 : vector<2x32xf32>
    %47 = vector.extract_strided_slice %7 {offsets = [4, 0], sizes = [2, 128], strides = [1, 1]} : vector<16x128xf32> to vector<2x128xf32>
    %cst_10 = arith.constant dense<0.000000e+00> : vector<2x128xf32>
    %48 = tpu.matmul %46, %8, %cst_10 {dimension_numbers = #tpu.dot_dimension_numbers<[1], [0], [0], [1], [0, 0, 1, 1], [], []>} : vector<2x32xf32>, vector<32x128xf32>, vector<2x128xf32> -> vector<2x128xf32>
    %49 = arith.addf %47, %48 : vector<2x128xf32>
    %50 = arith.negf %49 : vector<2x128xf32>
    %51 = math.exp %50 : vector<2x128xf32>
    %cst_11 = arith.constant 1.000000e+00 : f32
    %52 = vector.broadcast %cst_11 : f32 to vector<2x128xf32>
    %53 = arith.addf %52, %51 : vector<2x128xf32>
    %54 = arith.divf %52, %53 : vector<2x128xf32>
    %55 = math.tanh %49 : vector<2x128xf32>
    %56 = vector.extract_strided_slice %54 {offsets = [0, 0], sizes = [2, 32], strides = [1, 1]} : vector<2x128xf32> to vector<2x32xf32>
    %57 = vector.extract_strided_slice %54 {offsets = [0, 32], sizes = [2, 32], strides = [1, 1]} : vector<2x128xf32> to vector<2x32xf32>
    %58 = vector.extract_strided_slice %54 {offsets = [0, 96], sizes = [2, 32], strides = [1, 1]} : vector<2x128xf32> to vector<2x32xf32>
    %59 = vector.extract_strided_slice %55 {offsets = [0, 64], sizes = [2, 32], strides = [1, 1]} : vector<2x128xf32> to vector<2x32xf32>
    %60 = arith.mulf %57, %44 : vector<2x32xf32>
    %61 = arith.mulf %56, %59 : vector<2x32xf32>
    %62 = arith.addf %60, %61 : vector<2x32xf32>
    %63 = math.tanh %62 : vector<2x32xf32>
    %64 = arith.mulf %58, %63 : vector<2x32xf32>
    %65 = vector.extract_strided_slice %7 {offsets = [6, 0], sizes = [2, 128], strides = [1, 1]} : vector<16x128xf32> to vector<2x128xf32>
    %cst_12 = arith.constant dense<0.000000e+00> : vector<2x128xf32>
    %66 = tpu.matmul %64, %8, %cst_12 {dimension_numbers = #tpu.dot_dimension_numbers<[1], [0], [0], [1], [0, 0, 1, 1], [], []>} : vector<2x32xf32>, vector<32x128xf32>, vector<2x128xf32> -> vector<2x128xf32>
    %67 = arith.addf %65, %66 : vector<2x128xf32>
    %68 = arith.negf %67 : vector<2x128xf32>
    %69 = math.exp %68 : vector<2x128xf32>
    %cst_13 = arith.constant 1.000000e+00 : f32
    %70 = vector.broadcast %cst_13 : f32 to vector<2x128xf32>
    %71 = arith.addf %70, %69 : vector<2x128xf32>
    %72 = arith.divf %70, %71 : vector<2x128xf32>
    %73 = math.tanh %67 : vector<2x128xf32>
    %74 = vector.extract_strided_slice %72 {offsets = [0, 0], sizes = [2, 32], strides = [1, 1]} : vector<2x128xf32> to vector<2x32xf32>
    %75 = vector.extract_strided_slice %72 {offsets = [0, 32], sizes = [2, 32], strides = [1, 1]} : vector<2x128xf32> to vector<2x32xf32>
    %76 = vector.extract_strided_slice %72 {offsets = [0, 96], sizes = [2, 32], strides = [1, 1]} : vector<2x128xf32> to vector<2x32xf32>
    %77 = vector.extract_strided_slice %73 {offsets = [0, 64], sizes = [2, 32], strides = [1, 1]} : vector<2x128xf32> to vector<2x32xf32>
    %78 = arith.mulf %75, %62 : vector<2x32xf32>
    %79 = arith.mulf %74, %77 : vector<2x32xf32>
    %80 = arith.addf %78, %79 : vector<2x32xf32>
    %81 = math.tanh %80 : vector<2x32xf32>
    %82 = arith.mulf %76, %81 : vector<2x32xf32>
    %83 = vector.extract_strided_slice %7 {offsets = [8, 0], sizes = [2, 128], strides = [1, 1]} : vector<16x128xf32> to vector<2x128xf32>
    %cst_14 = arith.constant dense<0.000000e+00> : vector<2x128xf32>
    %84 = tpu.matmul %82, %8, %cst_14 {dimension_numbers = #tpu.dot_dimension_numbers<[1], [0], [0], [1], [0, 0, 1, 1], [], []>} : vector<2x32xf32>, vector<32x128xf32>, vector<2x128xf32> -> vector<2x128xf32>
    %85 = arith.addf %83, %84 : vector<2x128xf32>
    %86 = arith.negf %85 : vector<2x128xf32>
    %87 = math.exp %86 : vector<2x128xf32>
    %cst_15 = arith.constant 1.000000e+00 : f32
    %88 = vector.broadcast %cst_15 : f32 to vector<2x128xf32>
    %89 = arith.addf %88, %87 : vector<2x128xf32>
    %90 = arith.divf %88, %89 : vector<2x128xf32>
    %91 = math.tanh %85 : vector<2x128xf32>
    %92 = vector.extract_strided_slice %90 {offsets = [0, 0], sizes = [2, 32], strides = [1, 1]} : vector<2x128xf32> to vector<2x32xf32>
    %93 = vector.extract_strided_slice %90 {offsets = [0, 32], sizes = [2, 32], strides = [1, 1]} : vector<2x128xf32> to vector<2x32xf32>
    %94 = vector.extract_strided_slice %90 {offsets = [0, 96], sizes = [2, 32], strides = [1, 1]} : vector<2x128xf32> to vector<2x32xf32>
    %95 = vector.extract_strided_slice %91 {offsets = [0, 64], sizes = [2, 32], strides = [1, 1]} : vector<2x128xf32> to vector<2x32xf32>
    %96 = arith.mulf %93, %80 : vector<2x32xf32>
    %97 = arith.mulf %92, %95 : vector<2x32xf32>
    %98 = arith.addf %96, %97 : vector<2x32xf32>
    %99 = math.tanh %98 : vector<2x32xf32>
    %100 = arith.mulf %94, %99 : vector<2x32xf32>
    %101 = vector.extract_strided_slice %7 {offsets = [10, 0], sizes = [2, 128], strides = [1, 1]} : vector<16x128xf32> to vector<2x128xf32>
    %cst_16 = arith.constant dense<0.000000e+00> : vector<2x128xf32>
    %102 = tpu.matmul %100, %8, %cst_16 {dimension_numbers = #tpu.dot_dimension_numbers<[1], [0], [0], [1], [0, 0, 1, 1], [], []>} : vector<2x32xf32>, vector<32x128xf32>, vector<2x128xf32> -> vector<2x128xf32>
    %103 = arith.addf %101, %102 : vector<2x128xf32>
    %104 = arith.negf %103 : vector<2x128xf32>
    %105 = math.exp %104 : vector<2x128xf32>
    %cst_17 = arith.constant 1.000000e+00 : f32
    %106 = vector.broadcast %cst_17 : f32 to vector<2x128xf32>
    %107 = arith.addf %106, %105 : vector<2x128xf32>
    %108 = arith.divf %106, %107 : vector<2x128xf32>
    %109 = math.tanh %103 : vector<2x128xf32>
    %110 = vector.extract_strided_slice %108 {offsets = [0, 0], sizes = [2, 32], strides = [1, 1]} : vector<2x128xf32> to vector<2x32xf32>
    %111 = vector.extract_strided_slice %108 {offsets = [0, 32], sizes = [2, 32], strides = [1, 1]} : vector<2x128xf32> to vector<2x32xf32>
    %112 = vector.extract_strided_slice %108 {offsets = [0, 96], sizes = [2, 32], strides = [1, 1]} : vector<2x128xf32> to vector<2x32xf32>
    %113 = vector.extract_strided_slice %109 {offsets = [0, 64], sizes = [2, 32], strides = [1, 1]} : vector<2x128xf32> to vector<2x32xf32>
    %114 = arith.mulf %111, %98 : vector<2x32xf32>
    %115 = arith.mulf %110, %113 : vector<2x32xf32>
    %116 = arith.addf %114, %115 : vector<2x32xf32>
    %117 = math.tanh %116 : vector<2x32xf32>
    %118 = arith.mulf %112, %117 : vector<2x32xf32>
    %119 = vector.extract_strided_slice %7 {offsets = [12, 0], sizes = [2, 128], strides = [1, 1]} : vector<16x128xf32> to vector<2x128xf32>
    %cst_18 = arith.constant dense<0.000000e+00> : vector<2x128xf32>
    %120 = tpu.matmul %118, %8, %cst_18 {dimension_numbers = #tpu.dot_dimension_numbers<[1], [0], [0], [1], [0, 0, 1, 1], [], []>} : vector<2x32xf32>, vector<32x128xf32>, vector<2x128xf32> -> vector<2x128xf32>
    %121 = arith.addf %119, %120 : vector<2x128xf32>
    %122 = arith.negf %121 : vector<2x128xf32>
    %123 = math.exp %122 : vector<2x128xf32>
    %cst_19 = arith.constant 1.000000e+00 : f32
    %124 = vector.broadcast %cst_19 : f32 to vector<2x128xf32>
    %125 = arith.addf %124, %123 : vector<2x128xf32>
    %126 = arith.divf %124, %125 : vector<2x128xf32>
    %127 = math.tanh %121 : vector<2x128xf32>
    %128 = vector.extract_strided_slice %126 {offsets = [0, 0], sizes = [2, 32], strides = [1, 1]} : vector<2x128xf32> to vector<2x32xf32>
    %129 = vector.extract_strided_slice %126 {offsets = [0, 32], sizes = [2, 32], strides = [1, 1]} : vector<2x128xf32> to vector<2x32xf32>
    %130 = vector.extract_strided_slice %126 {offsets = [0, 96], sizes = [2, 32], strides = [1, 1]} : vector<2x128xf32> to vector<2x32xf32>
    %131 = vector.extract_strided_slice %127 {offsets = [0, 64], sizes = [2, 32], strides = [1, 1]} : vector<2x128xf32> to vector<2x32xf32>
    %132 = arith.mulf %129, %116 : vector<2x32xf32>
    %133 = arith.mulf %128, %131 : vector<2x32xf32>
    %134 = arith.addf %132, %133 : vector<2x32xf32>
    %135 = math.tanh %134 : vector<2x32xf32>
    %136 = arith.mulf %130, %135 : vector<2x32xf32>
    %137 = vector.extract_strided_slice %7 {offsets = [14, 0], sizes = [2, 128], strides = [1, 1]} : vector<16x128xf32> to vector<2x128xf32>
    %cst_20 = arith.constant dense<0.000000e+00> : vector<2x128xf32>
    %138 = tpu.matmul %136, %8, %cst_20 {dimension_numbers = #tpu.dot_dimension_numbers<[1], [0], [0], [1], [0, 0, 1, 1], [], []>} : vector<2x32xf32>, vector<32x128xf32>, vector<2x128xf32> -> vector<2x128xf32>
    %139 = arith.addf %137, %138 : vector<2x128xf32>
    %140 = arith.negf %139 : vector<2x128xf32>
    %141 = math.exp %140 : vector<2x128xf32>
    %cst_21 = arith.constant 1.000000e+00 : f32
    %142 = vector.broadcast %cst_21 : f32 to vector<2x128xf32>
    %143 = arith.addf %142, %141 : vector<2x128xf32>
    %144 = arith.divf %142, %143 : vector<2x128xf32>
    %145 = math.tanh %139 : vector<2x128xf32>
    %146 = vector.extract_strided_slice %144 {offsets = [0, 0], sizes = [2, 32], strides = [1, 1]} : vector<2x128xf32> to vector<2x32xf32>
    %147 = vector.extract_strided_slice %144 {offsets = [0, 32], sizes = [2, 32], strides = [1, 1]} : vector<2x128xf32> to vector<2x32xf32>
    %148 = vector.extract_strided_slice %144 {offsets = [0, 96], sizes = [2, 32], strides = [1, 1]} : vector<2x128xf32> to vector<2x32xf32>
    %149 = vector.extract_strided_slice %145 {offsets = [0, 64], sizes = [2, 32], strides = [1, 1]} : vector<2x128xf32> to vector<2x32xf32>
    %150 = arith.mulf %147, %134 : vector<2x32xf32>
    %151 = arith.mulf %146, %149 : vector<2x32xf32>
    %152 = arith.addf %150, %151 : vector<2x32xf32>
    %153 = math.tanh %152 : vector<2x32xf32>
    %154 = arith.mulf %148, %153 : vector<2x32xf32>
    %155 = tpu.concatenate %28, %46, %64, %82, %100, %118, %136, %154 in 0 : vector<2x32xf32>, vector<2x32xf32>, vector<2x32xf32>, vector<2x32xf32>, vector<2x32xf32>, vector<2x32xf32>, vector<2x32xf32>, vector<2x32xf32> -> vector<16x32xf32>
    %c0_22 = arith.constant 0 : index
    %c0_23 = arith.constant 0 : index
    %156 = vector.load %arg2[%c0_22, %c0_23] : memref<35x64xf32, #tpu.memory_space<vmem>>, vector<32x64xf32>
    %157 = vector.extract_strided_slice %156 {offsets = [0, 0], sizes = [32, 32], strides = [1, 1]} : vector<32x64xf32> to vector<32x32xf32>
    %158 = vector.extract_strided_slice %156 {offsets = [0, 32], sizes = [32, 32], strides = [1, 1]} : vector<32x64xf32> to vector<32x32xf32>
    %c32 = arith.constant 32 : index
    %c0_24 = arith.constant 0 : index
    %159 = vector.load %arg2[%c32, %c0_24] : memref<35x64xf32, #tpu.memory_space<vmem>>, vector<1x64xf32>
    %160 = vector.extract_strided_slice %159 {offsets = [0, 0], sizes = [1, 32], strides = [1, 1]} : vector<1x64xf32> to vector<1x32xf32>
    %161 = vector.extract_strided_slice %159 {offsets = [0, 32], sizes = [1, 32], strides = [1, 1]} : vector<1x64xf32> to vector<1x32xf32>
    %c33 = arith.constant 33 : index
    %c0_25 = arith.constant 0 : index
    %162 = vector.load %arg2[%c33, %c0_25] : memref<35x64xf32, #tpu.memory_space<vmem>>, vector<2x16xf32>
    %cst_26 = arith.constant dense<0.000000e+00> : vector<1x32xf32>
    %163 = tpu.matmul %160, %157, %cst_26 {dimension_numbers = #tpu.dot_dimension_numbers<[1], [0], [0], [1], [0, 0, 1, 1], [], []>} : vector<1x32xf32>, vector<32x32xf32>, vector<1x32xf32> -> vector<1x32xf32>
    %164 = arith.addf %163, %161 : vector<1x32xf32>
    %c192 = arith.constant 192 : index
    %c0_27 = arith.constant 0 : index
    %165 = vector.load %arg1[%c192, %c0_27] : memref<226x128xf32, #tpu.memory_space<vmem>>, vector<32x128xf32>
    %c225 = arith.constant 225 : index
    %c0_28 = arith.constant 0 : index
    %166 = vector.load %arg1[%c225, %c0_28] : memref<226x128xf32, #tpu.memory_space<vmem>>, vector<1x128xf32>
    %167 = vector.extract_strided_slice %165 {offsets = [0, 0], sizes = [32, 64], strides = [1, 1]} : vector<32x128xf32> to vector<32x64xf32>
    %168 = vector.extract_strided_slice %165 {offsets = [0, 64], sizes = [32, 64], strides = [1, 1]} : vector<32x128xf32> to vector<32x64xf32>
    %169 = vector.extract_strided_slice %166 {offsets = [0, 0], sizes = [1, 64], strides = [1, 1]} : vector<1x128xf32> to vector<1x64xf32>
    %170 = vector.extract_strided_slice %166 {offsets = [0, 64], sizes = [1, 64], strides = [1, 1]} : vector<1x128xf32> to vector<1x64xf32>
    %cst_29 = arith.constant dense<0.000000e+00> : vector<16x64xf32>
    %171 = tpu.matmul %155, %167, %cst_29 {dimension_numbers = #tpu.dot_dimension_numbers<[1], [0], [0], [1], [0, 0, 1, 1], [], []>} : vector<16x32xf32>, vector<32x64xf32>, vector<16x64xf32> -> vector<16x64xf32>
    %172 = vector.broadcast %169 : vector<1x64xf32> to vector<16x64xf32>
    %173 = arith.addf %171, %172 : vector<16x64xf32>
    %174 = vector.extract_strided_slice %173 {offsets = [0, 0], sizes = [16, 32], strides = [1, 1]} : vector<16x64xf32> to vector<16x32xf32>
    %175 = vector.extract_strided_slice %173 {offsets = [0, 32], sizes = [16, 32], strides = [1, 1]} : vector<16x64xf32> to vector<16x32xf32>
    %176 = vector.broadcast %164 : vector<1x32xf32> to vector<16x32xf32>
    %177 = arith.mulf %176, %174 : vector<16x32xf32>
    %cst_30 = arith.constant dense<0.000000e+00> : vector<16x32xf32>
    %178 = tpu.matmul %177, %158, %cst_30 {dimension_numbers = #tpu.dot_dimension_numbers<[1], [0], [0], [1], [0, 0, 1, 1], [], []>} : vector<16x32xf32>, vector<32x32xf32>, vector<16x32xf32> -> vector<16x32xf32>
    %cst_31 = arith.constant dense<0xFF800000> : vector<32xf32>
    %179 = vector.multi_reduction <maximumf>, %178, %cst_31 [0] : vector<16x32xf32> to vector<32xf32>
    %180 = vector.shape_cast %179 : vector<32xf32> to vector<1x32xf32>
    %181 = vector.broadcast %180 : vector<1x32xf32> to vector<16x32xf32>
    %182 = arith.subf %178, %181 : vector<16x32xf32>
    %183 = math.exp %182 : vector<16x32xf32>
    %184 = arith.mulf %183, %175 : vector<16x32xf32>
    %185 = tpu.concatenate %184, %183 in 1 : vector<16x32xf32>, vector<16x32xf32> -> vector<16x64xf32>
    %cst_32 = arith.constant dense<0.000000e+00> : vector<2x64xf32>
    %186 = tpu.matmul %162, %185, %cst_32 {dimension_numbers = #tpu.dot_dimension_numbers<[1], [0], [0], [1], [0, 0, 1, 1], [], []>} : vector<2x16xf32>, vector<16x64xf32>, vector<2x64xf32> -> vector<2x64xf32>
    %187 = vector.extract_strided_slice %186 {offsets = [0, 0], sizes = [2, 32], strides = [1, 1]} : vector<2x64xf32> to vector<2x32xf32>
    %188 = vector.extract_strided_slice %186 {offsets = [0, 32], sizes = [2, 32], strides = [1, 1]} : vector<2x64xf32> to vector<2x32xf32>
    %189 = arith.divf %187, %188 : vector<2x32xf32>
    %c96 = arith.constant 96 : index
    %c0_33 = arith.constant 0 : index
    %190 = vector.load %arg1[%c96, %c0_33] : memref<226x128xf32, #tpu.memory_space<vmem>>, vector<32x128xf32>
    %c128 = arith.constant 128 : index
    %c0_34 = arith.constant 0 : index
    %191 = vector.load %arg1[%c128, %c0_34] : memref<226x128xf32, #tpu.memory_space<vmem>>, vector<32x128xf32>
    %c160 = arith.constant 160 : index
    %c0_35 = arith.constant 0 : index
    %192 = vector.load %arg1[%c160, %c0_35] : memref<226x128xf32, #tpu.memory_space<vmem>>, vector<32x128xf32>
    %c224 = arith.constant 224 : index
    %c0_36 = arith.constant 0 : index
    %193 = vector.load %arg1[%c224, %c0_36] : memref<226x128xf32, #tpu.memory_space<vmem>>, vector<1x128xf32>
    %cst_37 = arith.constant dense<0.000000e+00> : vector<1x128xf32>
    %194 = tpu.matmul %160, %190, %cst_37 {dimension_numbers = #tpu.dot_dimension_numbers<[1], [0], [0], [1], [0, 0, 1, 1], [], []>} : vector<1x32xf32>, vector<32x128xf32>, vector<1x128xf32> -> vector<1x128xf32>
    %195 = arith.addf %194, %193 : vector<1x128xf32>
    %cst_38 = arith.constant dense<0.000000e+00> : vector<2x128xf32>
    %196 = tpu.matmul %189, %191, %cst_38 {dimension_numbers = #tpu.dot_dimension_numbers<[1], [0], [0], [1], [0, 0, 1, 1], [], []>} : vector<2x32xf32>, vector<32x128xf32>, vector<2x128xf32> -> vector<2x128xf32>
    %197 = vector.broadcast %195 : vector<1x128xf32> to vector<2x128xf32>
    %198 = arith.addf %197, %196 : vector<2x128xf32>
    %cst_39 = arith.constant dense<0.000000e+00> : vector<2x128xf32>
    %199 = tpu.matmul %154, %192, %cst_39 {dimension_numbers = #tpu.dot_dimension_numbers<[1], [0], [0], [1], [0, 0, 1, 1], [], []>} : vector<2x32xf32>, vector<32x128xf32>, vector<2x128xf32> -> vector<2x128xf32>
    %200 = arith.addf %198, %199 : vector<2x128xf32>
    %201 = arith.negf %200 : vector<2x128xf32>
    %202 = math.exp %201 : vector<2x128xf32>
    %cst_40 = arith.constant 1.000000e+00 : f32
    %203 = vector.broadcast %cst_40 : f32 to vector<2x128xf32>
    %204 = arith.addf %203, %202 : vector<2x128xf32>
    %205 = arith.divf %203, %204 : vector<2x128xf32>
    %206 = math.tanh %200 : vector<2x128xf32>
    %207 = vector.extract_strided_slice %205 {offsets = [0, 0], sizes = [2, 32], strides = [1, 1]} : vector<2x128xf32> to vector<2x32xf32>
    %208 = vector.extract_strided_slice %205 {offsets = [0, 32], sizes = [2, 32], strides = [1, 1]} : vector<2x128xf32> to vector<2x32xf32>
    %209 = vector.extract_strided_slice %205 {offsets = [0, 96], sizes = [2, 32], strides = [1, 1]} : vector<2x128xf32> to vector<2x32xf32>
    %210 = vector.extract_strided_slice %206 {offsets = [0, 64], sizes = [2, 32], strides = [1, 1]} : vector<2x128xf32> to vector<2x32xf32>
    %211 = arith.mulf %208, %152 : vector<2x32xf32>
    %212 = arith.mulf %207, %210 : vector<2x32xf32>
    %213 = arith.addf %211, %212 : vector<2x32xf32>
    %214 = math.tanh %213 : vector<2x32xf32>
    %215 = arith.mulf %209, %214 : vector<2x32xf32>
    %cst_41 = arith.constant dense<0.000000e+00> : vector<2x128xf32>
    %216 = tpu.matmul %215, %192, %cst_41 {dimension_numbers = #tpu.dot_dimension_numbers<[1], [0], [0], [1], [0, 0, 1, 1], [], []>} : vector<2x32xf32>, vector<32x128xf32>, vector<2x128xf32> -> vector<2x128xf32>
    %217 = arith.addf %198, %216 : vector<2x128xf32>
    %218 = arith.negf %217 : vector<2x128xf32>
    %219 = math.exp %218 : vector<2x128xf32>
    %cst_42 = arith.constant 1.000000e+00 : f32
    %220 = vector.broadcast %cst_42 : f32 to vector<2x128xf32>
    %221 = arith.addf %220, %219 : vector<2x128xf32>
    %222 = arith.divf %220, %221 : vector<2x128xf32>
    %223 = math.tanh %217 : vector<2x128xf32>
    %224 = vector.extract_strided_slice %222 {offsets = [0, 0], sizes = [2, 32], strides = [1, 1]} : vector<2x128xf32> to vector<2x32xf32>
    %225 = vector.extract_strided_slice %222 {offsets = [0, 32], sizes = [2, 32], strides = [1, 1]} : vector<2x128xf32> to vector<2x32xf32>
    %226 = vector.extract_strided_slice %222 {offsets = [0, 96], sizes = [2, 32], strides = [1, 1]} : vector<2x128xf32> to vector<2x32xf32>
    %227 = vector.extract_strided_slice %223 {offsets = [0, 64], sizes = [2, 32], strides = [1, 1]} : vector<2x128xf32> to vector<2x32xf32>
    %228 = arith.mulf %225, %213 : vector<2x32xf32>
    %229 = arith.mulf %224, %227 : vector<2x32xf32>
    %230 = arith.addf %228, %229 : vector<2x32xf32>
    %231 = math.tanh %230 : vector<2x32xf32>
    %232 = arith.mulf %226, %231 : vector<2x32xf32>
    %cst_43 = arith.constant dense<0.000000e+00> : vector<2x128xf32>
    %233 = tpu.matmul %232, %192, %cst_43 {dimension_numbers = #tpu.dot_dimension_numbers<[1], [0], [0], [1], [0, 0, 1, 1], [], []>} : vector<2x32xf32>, vector<32x128xf32>, vector<2x128xf32> -> vector<2x128xf32>
    %234 = arith.addf %198, %233 : vector<2x128xf32>
    %235 = arith.negf %234 : vector<2x128xf32>
    %236 = math.exp %235 : vector<2x128xf32>
    %cst_44 = arith.constant 1.000000e+00 : f32
    %237 = vector.broadcast %cst_44 : f32 to vector<2x128xf32>
    %238 = arith.addf %237, %236 : vector<2x128xf32>
    %239 = arith.divf %237, %238 : vector<2x128xf32>
    %240 = math.tanh %234 : vector<2x128xf32>
    %241 = vector.extract_strided_slice %239 {offsets = [0, 0], sizes = [2, 32], strides = [1, 1]} : vector<2x128xf32> to vector<2x32xf32>
    %242 = vector.extract_strided_slice %239 {offsets = [0, 32], sizes = [2, 32], strides = [1, 1]} : vector<2x128xf32> to vector<2x32xf32>
    %243 = vector.extract_strided_slice %239 {offsets = [0, 96], sizes = [2, 32], strides = [1, 1]} : vector<2x128xf32> to vector<2x32xf32>
    %244 = vector.extract_strided_slice %240 {offsets = [0, 64], sizes = [2, 32], strides = [1, 1]} : vector<2x128xf32> to vector<2x32xf32>
    %245 = arith.mulf %242, %230 : vector<2x32xf32>
    %246 = arith.mulf %241, %244 : vector<2x32xf32>
    %247 = arith.addf %245, %246 : vector<2x32xf32>
    %248 = math.tanh %247 : vector<2x32xf32>
    %249 = arith.mulf %243, %248 : vector<2x32xf32>
    %cst_45 = arith.constant dense<0.000000e+00> : vector<2x128xf32>
    %250 = tpu.matmul %249, %192, %cst_45 {dimension_numbers = #tpu.dot_dimension_numbers<[1], [0], [0], [1], [0, 0, 1, 1], [], []>} : vector<2x32xf32>, vector<32x128xf32>, vector<2x128xf32> -> vector<2x128xf32>
    %251 = arith.addf %198, %250 : vector<2x128xf32>
    %252 = arith.negf %251 : vector<2x128xf32>
    %253 = math.exp %252 : vector<2x128xf32>
    %cst_46 = arith.constant 1.000000e+00 : f32
    %254 = vector.broadcast %cst_46 : f32 to vector<2x128xf32>
    %255 = arith.addf %254, %253 : vector<2x128xf32>
    %256 = arith.divf %254, %255 : vector<2x128xf32>
    %257 = math.tanh %251 : vector<2x128xf32>
    %258 = vector.extract_strided_slice %256 {offsets = [0, 0], sizes = [2, 32], strides = [1, 1]} : vector<2x128xf32> to vector<2x32xf32>
    %259 = vector.extract_strided_slice %256 {offsets = [0, 32], sizes = [2, 32], strides = [1, 1]} : vector<2x128xf32> to vector<2x32xf32>
    %260 = vector.extract_strided_slice %256 {offsets = [0, 96], sizes = [2, 32], strides = [1, 1]} : vector<2x128xf32> to vector<2x32xf32>
    %261 = vector.extract_strided_slice %257 {offsets = [0, 64], sizes = [2, 32], strides = [1, 1]} : vector<2x128xf32> to vector<2x32xf32>
    %262 = arith.mulf %259, %247 : vector<2x32xf32>
    %263 = arith.mulf %258, %261 : vector<2x32xf32>
    %264 = arith.addf %262, %263 : vector<2x32xf32>
    %265 = math.tanh %264 : vector<2x32xf32>
    %266 = arith.mulf %260, %265 : vector<2x32xf32>
    %cst_47 = arith.constant dense<0.000000e+00> : vector<2x128xf32>
    %267 = tpu.matmul %266, %192, %cst_47 {dimension_numbers = #tpu.dot_dimension_numbers<[1], [0], [0], [1], [0, 0, 1, 1], [], []>} : vector<2x32xf32>, vector<32x128xf32>, vector<2x128xf32> -> vector<2x128xf32>
    %268 = arith.addf %198, %267 : vector<2x128xf32>
    %269 = arith.negf %268 : vector<2x128xf32>
    %270 = math.exp %269 : vector<2x128xf32>
    %cst_48 = arith.constant 1.000000e+00 : f32
    %271 = vector.broadcast %cst_48 : f32 to vector<2x128xf32>
    %272 = arith.addf %271, %270 : vector<2x128xf32>
    %273 = arith.divf %271, %272 : vector<2x128xf32>
    %274 = math.tanh %268 : vector<2x128xf32>
    %275 = vector.extract_strided_slice %273 {offsets = [0, 0], sizes = [2, 32], strides = [1, 1]} : vector<2x128xf32> to vector<2x32xf32>
    %276 = vector.extract_strided_slice %273 {offsets = [0, 32], sizes = [2, 32], strides = [1, 1]} : vector<2x128xf32> to vector<2x32xf32>
    %277 = vector.extract_strided_slice %273 {offsets = [0, 96], sizes = [2, 32], strides = [1, 1]} : vector<2x128xf32> to vector<2x32xf32>
    %278 = vector.extract_strided_slice %274 {offsets = [0, 64], sizes = [2, 32], strides = [1, 1]} : vector<2x128xf32> to vector<2x32xf32>
    %279 = arith.mulf %276, %264 : vector<2x32xf32>
    %280 = arith.mulf %275, %278 : vector<2x32xf32>
    %281 = arith.addf %279, %280 : vector<2x32xf32>
    %282 = math.tanh %281 : vector<2x32xf32>
    %283 = arith.mulf %277, %282 : vector<2x32xf32>
    %284 = tpu.concatenate %215, %232, %249, %266, %283 in 0 : vector<2x32xf32>, vector<2x32xf32>, vector<2x32xf32>, vector<2x32xf32>, vector<2x32xf32> -> vector<10x32xf32>
    %cst_49 = arith.constant dense<0.000000e+00> : vector<10x64xf32>
    %285 = tpu.matmul %284, %168, %cst_49 {dimension_numbers = #tpu.dot_dimension_numbers<[1], [0], [0], [1], [0, 0, 1, 1], [], []>} : vector<10x32xf32>, vector<32x64xf32>, vector<10x64xf32> -> vector<10x64xf32>
    %286 = vector.broadcast %170 : vector<1x64xf32> to vector<10x64xf32>
    %287 = arith.addf %285, %286 : vector<10x64xf32>
    %cst_50 = arith.constant 0.000000e+00 : f32
    %288 = vector.broadcast %cst_50 : f32 to vector<2x64xf32>
    %289 = tpu.concatenate %288, %287 in 0 : vector<2x64xf32>, vector<10x64xf32> -> vector<12x64xf32>
    %c0_51 = arith.constant 0 : index
    %c0_52 = arith.constant 0 : index
    %290 = vector.load %arg3[%c0_51, %c0_52] : memref<12x64xf32, #tpu.memory_space<vmem>>, vector<12x64xf32>
    tpu.vector_store %arg3[%c0_51, %c0_52], %289 {strides = array<i32>} : memref<12x64xf32, #tpu.memory_space<vmem>>, vector<12x64xf32>,
    return
  }
}

</mosaic_0001>

<bundles_post_ra>
// kernel: seq2seq_forward.1
= control target key start
LH: loop header
LB: loop body
LE: loop exit
PB: predicated region body
PF: predicated region fallthrough
CT: control target
= control target key end

     0   :  { %v1465_v0 = vmov 0   ;;  %v1466_v14 = vmov 0.0   ;;  %v16_v15 = vlaneseq  ;;  %vm38_vm0 = vcmask 523264   ;;  %s1467_s11 = smov 64   ;;  %s1468_s12 = smov 32   ;;  %s1886_s0 = inlined_call_operand.vmem [shape: s32[16,1], index: 0, kind: input, shape index: {}]   ;;  %s1887_s1 = inlined_call_operand.vmem [shape: f32[226,128], index: 1, kind: input, shape index: {}]   ;;  %s1888_s2 = inlined_call_operand.vmem [shape: f32[35,64], index: 2, kind: input, shape index: {}]   ;;  %s1889_s3 = inlined_call_operand.vmem [shape: f32[12,64], index: 3, kind: output, shape index: {}]  }
   0x1   :  { %1327 = vset.pattern.permute.xlu0 %v1465_v0  ;;  %v14_v1 = vld [vmem:[%s1886_s0] sm:$0xff]  ;;  %v37_v2 = vld [vmem:[%s1887_s1 + $0x38] sm:$0xff]  ;;  %v36_v3 = vld [vmem:[%s1887_s1 + $0x30] sm:$0xff]  ;;  %1328 = vset.pattern.permute.xlu2 %v1465_v0  ;;  %vm72_vm6 = vcmask 261120   ;;  %vm619_vm15 = vcmask 1041408   ;;  %s1469_s26 = smov 96  }
   0x2   :  { %19 = vperm.xlu0 %1327, %v14_v1   ;;  %53 = vmatpush.msra.mxu0 %v37_v2  ;;  %v35_v4 = vld [vmem:[%s1887_s1 + $0x28] sm:$0xff]  ;;  %v1505_v5 = vld [vmem:[%s1887_s1 + $0x58] sm:$0xff]  ;;  %v1510_v6 = vld [vmem:[%s1887_s1 + $0x50] sm:$0xff]  ;;  %v1566_v16 = vand.u32 127, %v16_v15 }
   0x3   :  { %88 = vmatpush.msra.mxu1 %v1505_v5  ;;  %v34_v7 = vld [vmem:[%s1887_s1 + $0x20] sm:$0xff]  ;;  %v1519_v8 = vld [vmem:[%s1887_s1 + $0x48] sm:$0xff]  ;;  %151 = vmatpush.msra.mxu2 %v1505_v5  ;;  %v33_v9 = vld [vmem:[%s1887_s1 + $0x18] sm:$0xff] }
   0x4   :  { %54 = vmatpush.msra.mxu0 %v36_v3  ;;  %221 = vmatpush.msra.mxu3 %v1505_v5  ;;  %v32_v10 = vld [vmem:[%s1887_s1 + $0x10] sm:$0xff]  ;;  %v31_v11 = vld [vmem:[%s1887_s1 + $0x8] sm:$0xff]  ;;  %v30_v12 = vld [vmem:[%s1887_s1] sm:$0xff] }
   0x5   :  { %89 = vmatpush.msra.mxu1 %v1510_v6  ;;  %152 = vmatpush.msra.mxu2 %v1510_v6  ;;  %v1544_v13 = vld [vmem:[%s1887_s1 + $0x40] sm:$0xff] }
   0x6   :  { %55 = vmatpush.msra.mxu0 %v35_v4  ;;  %222 = vmatpush.msra.mxu3 %v1510_v6 }
   0x7   :  { %90 = vmatpush.msra.mxu1 %v1519_v8  ;;  %153 = vmatpush.msra.mxu2 %v1519_v8 }
   0x8   :  { %56 = vmatpush.msra.mxu0 %v34_v7  ;;  %223 = vmatpush.msra.mxu3 %v1519_v8 }
   0x9   :  { %91 = vmatpush.msra.mxu1 %v1544_v13  ;;  %154 = vmatpush.msra.mxu2 %v1544_v13 }
   0xa   :  { %57 = vmatpush.msra.mxu0 %v33_v9  ;;  %92 = vmatmul.f32.vlgmr.msra.gmra.mxu1 %v1466_v14 }
   0xb   :  { %224 = vmatpush.msra.mxu3 %v1544_v13  ;;  %291 = vmatpush.msrb.mxu1 %v1505_v5 }
   0xc   :  { %58 = vmatpush.msra.mxu0 %v32_v10  ;;  %361 = vmatpush.msrb.mxu2 %v1505_v5 }
   0xd   :  { %427 = vmatpush.msrb.mxu3 %v1505_v5  ;;  %292 = vmatpush.msrb.mxu1 %v1510_v6 }
   0xe   :  { %59 = vmatpush.msra.mxu0 %v31_v11  ;;  %362 = vmatpush.msrb.mxu2 %v1510_v6 }
   0xf   :  { %428 = vmatpush.msrb.mxu3 %v1510_v6  ;;  %293 = vmatpush.msrb.mxu1 %v1519_v8 }
  0x10   :  { %60 = vmatpush.msra.mxu0 %v30_v12  ;;  %363 = vmatpush.msrb.mxu2 %v1519_v8 }
  0x11   :  { %429 = vmatpush.msrb.mxu3 %v1519_v8  ;;  %294 = vmatpush.msrb.mxu1 %v1544_v13 }
  0x12   :  { %364 = vmatpush.msrb.mxu2 %v1544_v13 }
  0x13   :  { %430 = vmatpush.msrb.mxu3 %v1544_v13  ;;  %497 = vmatpush.msra.mxu1 %v1505_v5 }
  0x15   :  { %498 = vmatpush.msra.mxu1 %v1510_v6 }
  0x17   :  { %499 = vmatpush.msra.mxu1 %v1519_v8 }
  0x19   :  { %500 = vmatpush.msra.mxu1 %v1544_v13 }
  0x74   :  { %v20_v17 = vpop.permute.xlu0 %19 }
  0x75   :  { %vm24_vm1 = vcmp.eq.s32.totalorder %v20_v17, %v1566_v16 }
  0x76   :  { %v1279_v18 = vsel %vm24_vm1, 1.0, %v1466_v14  ;;  %vm621_vm1 = vcmask 1043456  }
  0x77   :  { %1281 = vmatmul.msk.f32.vlgmr.msra.gmra.mxu0 %vm38_vm0, %v1279_v18 }
  0x87   :  { %v93_v19 = vpop.f32.mrf.mxu1 }
  0xf4   :  { %v1571_v20 = vpop.f32.mrf.mxu0 }
  0xf5   :  { %v96_v21 = vadd.f32 %v93_v19, %v1571_v20 }
  0xf7   :  { %1355 = vtanh.f32 %v96_v21  ;;  %v1283_v23 = vmul.f32 -1.442695, %v96_v21 }
  0xf9   :  { %1357 = vpow2.f32 %v1283_v23 }
  0xfd   :  { %v1356_v22 = vpop.eup %1355 }
  0xfe   :  { %119 = vrot.lane.b32.xlu0 %v1356_v22, %s1467_s11 }
  0xff   :  { %v1358_v24 = vpop.eup %1357 }
 0x100   :  { %v100_v25 = vadd.f32 1.0, %v1358_v24 }
 0x102   :  { %1359 = vrcp.f32 %v100_v25  ;;  %v112_v31 = vand.u32 2147483648, %v100_v25  ;;  %vm106_vm3 = vweird.f32 %v100_v25  ;;  %v110_v32 = vand.u32 2147483647, %v100_v25 }
 0x104   :  { %v113_v34 = vor.u32 1.1754944e-38, %v112_v31  ;;  %vm111_vm5 = vcmp.eq.f32.partialorder %v110_v32, 8.507059e+37 }
 0x108   :  { %v1360_v26 = vpop.eup %1359 }
 0x109   :  { %v102_v27 = vmul.f32 %v1360_v26, %v100_v25  ;;  %vm107_vm2 = vweird.f32 %v1360_v26 }
 0x10a   :  { %vm108_vm4 = vmor %vm106_vm3, %vm107_vm2 }
 0x10b   :  { %v103_v28 = vsub.f32 1.0, %v102_v27 }
 0x10d   :  { %v104_v29 = vmul.f32 %v1360_v26, %v103_v28 }
 0x10f   :  { %v105_v30 = vadd.f32 %v1360_v26, %v104_v29 }
 0x111   :  { %v109_v33 = vsel %vm108_vm4, %v1360_v26, %v105_v30 }
 0x112   :  { %v114_v36 = vsel %vm111_vm5, %v113_v34, %v109_v33 }
 0x113   :  { %v117_v38 = vmul.f32 0.0, %v114_v36 }
 0x170   :  { %v120_v35 = vpop.permute.xlu0 %119 }
 0x171   :  { %v122_v37 = vmul.f32 %v120_v35, %v114_v36 }
 0x173   :  { %124 = vrot.lane.b32.xlu1 %v122_v37, %s1468_s12 }
 0x1e5   :  { %v125_v39 = vpop.permute.xlu1 %124 }
 0x1e6   :  { %v127_v40 = vadd.f32 %v125_v39, %v117_v38 }
 0x1e8   :  { %1361 = vtanh.f32 %v127_v40  ;;  %v184_v0 = vrot.slane %v127_v40, 6 }
 0x1ee   :  { %v1362_v41 = vpop.eup %1361 }
 0x1ef   :  { %130 = vrot.lane.b32.xlu1 %v1362_v41, %s1467_s11 }
 0x261   :  { %v131_v42 = vpop.permute.xlu1 %130 }
 0x262   :  { %v1577_v43 = vmul.f32 %v131_v42, %v114_v36 }
 0x264   :  { %135 = vrot.lane.b32.xlu2 %v1577_v43, %s1468_s12 }
 0x2be   :  { %v136_v44 = vpop.permute.xlu2 %135 }
 0x2bf   :  { %1284 = vmatmul.msk.f32.vlgmr.msra.gmra.mxu2 %vm72_vm6, %v136_v44 }
 0x2c0   :  { %567 = vmatpush.msra.mxu2 %v1505_v5 }
 0x2c2   :  { %568 = vmatpush.msra.mxu2 %v1510_v6 }
 0x2c4   :  { %569 = vmatpush.msra.mxu2 %v1519_v8 }
 0x2c6   :  { %570 = vmatpush.msra.mxu2 %v1544_v13 }
 0x342   :  { %v156_v45 = vpop.f32.mrf.mxu2 }
 0x343   :  { %v160_v46 = vrot.slane %v156_v45, 6 }
 0x345   :  { %v162_v47 = vadd.f32 %v160_v46, %v1571_v20 }
 0x347   :  { %1363 = vtanh.f32 %v162_v47  ;;  %v1285_v49 = vmul.f32 -1.442695, %v162_v47 }
 0x349   :  { %1365 = vpow2.f32 %v1285_v49 }
 0x34d   :  { %v1364_v48 = vpop.eup %1363 }
 0x34e   :  { %188 = vrot.lane.b32.xlu2 %v1364_v48, %s1467_s11 }
 0x34f   :  { %v1366_v50 = vpop.eup %1365 }
 0x350   :  { %v166_v51 = vadd.f32 1.0, %v1366_v50 }
 0x352   :  { %1367 = vrcp.f32 %v166_v51  ;;  %v178_v57 = vand.u32 2147483648, %v166_v51  ;;  %vm172_vm8 = vweird.f32 %v166_v51  ;;  %v176_v58 = vand.u32 2147483647, %v166_v51 }
 0x354   :  { %v179_v60 = vor.u32 1.1754944e-38, %v178_v57  ;;  %vm177_vm10 = vcmp.eq.f32.partialorder %v176_v58, 8.507059e+37 }
 0x358   :  { %v1368_v52 = vpop.eup %1367 }
 0x359   :  { %v168_v53 = vmul.f32 %v1368_v52, %v166_v51  ;;  %vm173_vm7 = vweird.f32 %v1368_v52 }
 0x35a   :  { %vm174_vm9 = vmor %vm172_vm8, %vm173_vm7  ;;  %vm623_vm7 = vcmask 1045504  }
 0x35b   :  { %v169_v54 = vsub.f32 1.0, %v168_v53 }
 0x35d   :  { %v170_v55 = vmul.f32 %v1368_v52, %v169_v54 }
 0x35f   :  { %v171_v56 = vadd.f32 %v1368_v52, %v170_v55 }
 0x361   :  { %v175_v59 = vsel %vm174_vm9, %v1368_v52, %v171_v56 }
 0x362   :  { %v180_v62 = vsel %vm177_vm10, %v179_v60, %v175_v59 }
 0x363   :  { %v186_v1 = vmul.f32 %v184_v0, %v180_v62 }
 0x3a8   :  { %v189_v61 = vpop.permute.xlu2 %188 }
 0x3a9   :  { %v191_v63 = vmul.f32 %v189_v61, %v180_v62 }
 0x3ab   :  { %193 = vrot.lane.b32.xlu0 %v191_v63, %s1468_s12 }
 0x41d   :  { %v194_v2 = vpop.permute.xlu0 %193 }
 0x41e   :  { %v196_v3 = vadd.f32 %v194_v2, %v186_v1  ;;  %v15_v1 = vld [vmem:[%s1886_s0 + $0x8] sm:$0xff] }
 0x420   :  { %1369 = vtanh.f32 %v196_v3  ;;  %v254_v31 = vrot.slane %v196_v3, 6 }
 0x426   :  { %v1370_v4 = vpop.eup %1369 }
 0x427   :  { %199 = vrot.lane.b32.xlu1 %v1370_v4, %s1467_s11 }
 0x499   :  { %v200_v5 = vpop.permute.xlu1 %199 }
 0x49a   :  { %v202_v6 = vmul.f32 %v200_v5, %v180_v62 }
 0x49c   :  { %v204_v7 = vrot.slane %v202_v6, 2  ;;  %v620_v38 = vsel %vm619_vm15, %v1577_v43, %v202_v6 }
 0x49e   :  { %205 = vrot.lane.b32.xlu2 %v204_v7, %s1468_s12 }
 0x4f8   :  { %v206_v8 = vpop.permute.xlu2 %205 }
 0x4f9   :  { %1286 = vmatmul.msk.f32.vlgmr.msra.gmra.mxu3 %vm72_vm6, %v206_v8 }
 0x57c   :  { %v226_v9 = vpop.f32.mrf.mxu3 }
 0x57d   :  { %v230_v10 = vrot.slane %v226_v9, 4 }
 0x57f   :  { %v232_v11 = vadd.f32 %v230_v10, %v1571_v20 }
 0x581   :  { %1371 = vtanh.f32 %v232_v11  ;;  %v1287_v13 = vmul.f32 -1.442695, %v232_v11 }
 0x583   :  { %1373 = vpow2.f32 %v1287_v13 }
 0x587   :  { %v1372_v12 = vpop.eup %1371 }
 0x588   :  { %258 = vrot.lane.b32.xlu0 %v1372_v12, %s1467_s11 }
 0x589   :  { %v1374_v15 = vpop.eup %1373 }
 0x58a   :  { %v236_v17 = vadd.f32 1.0, %v1374_v15 }
 0x58c   :  { %1375 = vrcp.f32 %v236_v17  ;;  %v248_v24 = vand.u32 2147483648, %v236_v17  ;;  %vm242_vm12 = vweird.f32 %v236_v17  ;;  %v246_v25 = vand.u32 2147483647, %v236_v17 }
 0x58e   :  { %v249_v27 = vor.u32 1.1754944e-38, %v248_v24  ;;  %vm247_vm14 = vcmp.eq.f32.partialorder %v246_v25, 8.507059e+37 }
 0x592   :  { %v1376_v18 = vpop.eup %1375 }
 0x593   :  { %v238_v19 = vmul.f32 %v1376_v18, %v236_v17  ;;  %vm243_vm11 = vweird.f32 %v1376_v18 }
 0x594   :  { %vm244_vm13 = vmor %vm242_vm12, %vm243_vm11 }
 0x595   :  { %v239_v21 = vsub.f32 1.0, %v238_v19 }
 0x597   :  { %v240_v22 = vmul.f32 %v1376_v18, %v239_v21 }
 0x599   :  { %v241_v23 = vadd.f32 %v1376_v18, %v240_v22 }
 0x59b   :  { %v245_v26 = vsel %vm244_vm13, %v1376_v18, %v241_v23 }
 0x59c   :  { %v250_v29 = vsel %vm247_vm14, %v249_v27, %v245_v26 }
 0x59d   :  { %v256_v32 = vmul.f32 %v254_v31, %v250_v29 }
 0x5fa   :  { %v259_v28 = vpop.permute.xlu0 %258 }
 0x5fb   :  { %v261_v30 = vmul.f32 %v259_v28, %v250_v29 }
 0x5fd   :  { %263 = vrot.lane.b32.xlu1 %v261_v30, %s1468_s12 }
 0x66f   :  { %v264_v33 = vpop.permute.xlu1 %263 }
 0x670   :  { %v266_v34 = vadd.f32 %v264_v33, %v256_v32 }
 0x672   :  { %1377 = vtanh.f32 %v266_v34  ;;  %v324_v60 = vrot.slane %v266_v34, 6 }
 0x678   :  { %v1378_v35 = vpop.eup %1377 }
 0x679   :  { %269 = vrot.lane.b32.xlu2 %v1378_v35, %s1467_s11 }
 0x6d3   :  { %v270_v36 = vpop.permute.xlu2 %269 }
 0x6d4   :  { %v272_v37 = vmul.f32 %v270_v36, %v250_v29 }
 0x6d6   :  { %v274_v39 = vrot.slane %v272_v37, 4  ;;  %v622_v40 = vsel %vm621_vm1, %v620_v38, %v272_v37 }
 0x6d8   :  { %275 = vrot.lane.b32.xlu0 %v274_v39, %s1468_s12 }
 0x74a   :  { %v276_v41 = vpop.permute.xlu0 %275 }
 0x74b   :  { %1288 = vmatmul.msk.f32.vlgmr.msrb.gmra.mxu1 %vm72_vm6, %v276_v41 }
 0x7c8   :  { %v296_v42 = vpop.f32.mrf.mxu1 }
 0x7c9   :  { %v300_v44 = vrot.slane %v296_v42, 2 }
 0x7cb   :  { %v302_v45 = vadd.f32 %v300_v44, %v1571_v20 }
 0x7cd   :  { %1379 = vtanh.f32 %v302_v45  ;;  %v1289_v47 = vmul.f32 -1.442695, %v302_v45 }
 0x7cf   :  { %1381 = vpow2.f32 %v1289_v47 }
 0x7d3   :  { %v1380_v46 = vpop.eup %1379 }
 0x7d4   :  { %328 = vrot.lane.b32.xlu1 %v1380_v46, %s1467_s11 }
 0x7d5   :  { %v1382_v48 = vpop.eup %1381 }
 0x7d6   :  { %v306_v43 = vadd.f32 1.0, %v1382_v48 }
 0x7d8   :  { %1383 = vrcp.f32 %v306_v43  ;;  %v318_v54 = vand.u32 2147483648, %v306_v43  ;;  %vm312_vm3 = vweird.f32 %v306_v43  ;;  %v316_v55 = vand.u32 2147483647, %v306_v43 }
 0x7da   :  { %v319_v56 = vor.u32 1.1754944e-38, %v318_v54  ;;  %vm317_vm5 = vcmp.eq.f32.partialorder %v316_v55, 8.507059e+37 }
 0x7de   :  { %v1384_v49 = vpop.eup %1383 }
 0x7df   :  { %v308_v50 = vmul.f32 %v1384_v49, %v306_v43  ;;  %vm313_vm2 = vweird.f32 %v1384_v49 }
 0x7e0   :  { %vm314_vm4 = vmor %vm312_vm3, %vm313_vm2 }
 0x7e1   :  { %v309_v51 = vsub.f32 1.0, %v308_v50 }
 0x7e3   :  { %v310_v52 = vmul.f32 %v1384_v49, %v309_v51 }
 0x7e5   :  { %v311_v53 = vadd.f32 %v1384_v49, %v310_v52 }
 0x7e7   :  { %v315_v20 = vsel %vm314_vm4, %v1384_v49, %v311_v53 }
 0x7e8   :  { %v320_v58 = vsel %vm317_vm5, %v319_v56, %v315_v20 }
 0x7e9   :  { %v326_v61 = vmul.f32 %v324_v60, %v320_v58 }
 0x846   :  { %v329_v57 = vpop.permute.xlu1 %328 }
 0x847   :  { %v331_v59 = vmul.f32 %v329_v57, %v320_v58 }
 0x849   :  { %333 = vrot.lane.b32.xlu2 %v331_v59, %s1468_s12 }
 0x851   :  { %22 = vperm.xlu2 %1328, %v15_v1  }
 0x8a3   :  { %v334_v62 = vpop.permute.xlu2 %333 }
 0x8a4   :  { %v336_v63 = vadd.f32 %v334_v62, %v326_v61 }
 0x8a6   :  { %1385 = vtanh.f32 %v336_v63  ;;  %v391_v29 = vrot.slane %v336_v63, 6 }
 0x8ab   :  { %v23_v6 = vpop.permute.xlu2 %22 }
 0x8ac   :  { %v1386_v0 = vpop.eup %1385  ;;  %vm25_vm8 = vcmp.eq.s32.totalorder %v23_v6, %v1566_v16 }
 0x8ad   :  { %339 = vrot.lane.b32.xlu0 %v1386_v0, %s1467_s11  ;;  %v1280_v7 = vsel %vm25_vm8, 1.0, %v1466_v14 }
 0x8ae   :  { %1282 = vmatmul.msk.f32.gmra.mxu0 %vm38_vm0, %v1280_v7 }
 0x91f   :  { %v340_v2 = vpop.permute.xlu0 %339 }
 0x920   :  { %v342_v3 = vmul.f32 %v340_v2, %v320_v58 }
 0x922   :  { %v344_v4 = vrot.slane %v342_v3, 6  ;;  %v1609_v5 = vsel %vm623_vm7, %v622_v40, %v342_v3 }
 0x924   :  { %345 = vrot.lane.b32.xlu1 %v344_v4, %s1468_s12 }
 0x92b   :  { %v1616_v9 = vpop.f32.mrf.mxu0 }
 0x996   :  { %v346_v8 = vpop.permute.xlu1 %345 }
 0x997   :  { %1290 = vmatmul.msk.f32.vlgmr.msrb.gmra.mxu2 %vm72_vm6, %v346_v8 }
 0xa1a   :  { %v366_v10 = vpop.f32.mrf.mxu2 }
 0xa1b   :  { %v369_v11 = vadd.f32 %v366_v10, %v1616_v9 }
 0xa1d   :  { %1387 = vtanh.f32 %v369_v11  ;;  %v1291_v13 = vmul.f32 -1.442695, %v369_v11 }
 0xa1f   :  { %1389 = vpow2.f32 %v1291_v13 }
 0xa23   :  { %v1388_v12 = vpop.eup %1387 }
 0xa24   :  { %395 = vrot.lane.b32.xlu0 %v1388_v12, %s1467_s11 }
 0xa25   :  { %v1390_v15 = vpop.eup %1389 }
 0xa26   :  { %v373_v16 = vadd.f32 1.0, %v1390_v15 }
 0xa28   :  { %1391 = vrcp.f32 %v373_v16  ;;  %v385_v22 = vand.u32 2147483648, %v373_v16  ;;  %vm379_vm10 = vweird.f32 %v373_v16  ;;  %v383_v23 = vand.u32 2147483647, %v373_v16 }
 0xa2a   :  { %v386_v25 = vor.u32 1.1754944e-38, %v385_v22  ;;  %vm384_vm12 = vcmp.eq.f32.partialorder %v383_v23, 8.507059e+37 }
 0xa2e   :  { %v1392_v14 = vpop.eup %1391 }
 0xa2f   :  { %v375_v17 = vmul.f32 %v1392_v14, %v373_v16  ;;  %vm380_vm9 = vweird.f32 %v1392_v14 }
 0xa30   :  { %vm381_vm11 = vmor %vm379_vm10, %vm380_vm9 }
 0xa31   :  { %v376_v18 = vsub.f32 1.0, %v375_v17 }
 0xa33   :  { %v377_v19 = vmul.f32 %v1392_v14, %v376_v18 }
 0xa35   :  { %v378_v21 = vadd.f32 %v1392_v14, %v377_v19 }
 0xa37   :  { %v382_v24 = vsel %vm381_vm11, %v1392_v14, %v378_v21 }
 0xa38   :  { %v387_v27 = vsel %vm384_vm12, %v386_v25, %v382_v24 }
 0xa39   :  { %v393_v30 = vmul.f32 %v391_v29, %v387_v27 }
 0xa96   :  { %v396_v26 = vpop.permute.xlu0 %395 }
 0xa97   :  { %v398_v28 = vmul.f32 %v396_v26, %v387_v27 }
 0xa99   :  { %400 = vrot.lane.b32.xlu1 %v398_v28, %s1468_s12 }
 0xb0b   :  { %v401_v31 = vpop.permute.xlu1 %400 }
 0xb0c   :  { %v403_v32 = vadd.f32 %v401_v31, %v393_v30 }
 0xb0e   :  { %1393 = vtanh.f32 %v403_v32  ;;  %v460_v20 = vrot.slane %v403_v32, 6 }
 0xb14   :  { %v1394_v33 = vpop.eup %1393 }
 0xb15   :  { %406 = vrot.lane.b32.xlu2 %v1394_v33, %s1467_s11  ;;  %v1650_v33 = vld [vmem:[%s1888_s2 + $0x18] sm:$0xff] }
 0xb16   :  { %652 = vmatpush.msra.mxu3 %v1650_v33 }
 0xb6f   :  { %v407_v34 = vpop.permute.xlu2 %406 }
 0xb70   :  { %v1622_v35 = vmul.f32 %v407_v34, %v387_v27  ;;  %v1655_v34 = vld [vmem:[%s1888_s2 + $0x10] sm:$0xff] }
 0xb71   :  { %653 = vmatpush.msra.mxu3 %v1655_v34 }
 0xb72   :  { %411 = vrot.lane.b32.xlu0 %v1622_v35, %s1468_s12 }
 0xbe4   :  { %v412_v36 = vpop.permute.xlu0 %411 }
 0xbe5   :  { %1292 = vmatmul.msk.f32.vlgmr.msrb.gmra.mxu3 %vm72_vm6, %v412_v36  ;;  %v1663_v36 = vld [vmem:[%s1888_s2 + $0x8] sm:$0xff] }
 0xbe6   :  { %654 = vmatpush.msra.mxu3 %v1663_v36 }
 0xc68   :  { %v432_v37 = vpop.f32.mrf.mxu3 }
 0xc69   :  { %v436_v38 = vrot.slane %v432_v37, 6  ;;  %v1668_v37 = vld [vmem:[%s1888_s2] sm:$0xff] }
 0xc6a   :  { %655 = vmatpush.msra.mxu3 %v1668_v37 }
 0xc6b   :  { %v438_v39 = vadd.f32 %v436_v38, %v1616_v9  ;;  %v1334_v38 = vpack.i.bf16 %v1668_v37, %v1663_v36 }
 0xc6d   :  { %1395 = vtanh.f32 %v438_v39  ;;  %v1293_v41 = vmul.f32 -1.442695, %v438_v39 }
 0xc6f   :  { %1397 = vpow2.f32 %v1293_v41 }
 0xc73   :  { %v1396_v40 = vpop.eup %1395 }
 0xc74   :  { %464 = vrot.lane.b32.xlu1 %v1396_v40, %s1467_s11 }
 0xc75   :  { %v1398_v42 = vpop.eup %1397 }
 0xc76   :  { %v442_v44 = vadd.f32 1.0, %v1398_v42 }
 0xc78   :  { %1399 = vrcp.f32 %v442_v44  ;;  %v454_v49 = vand.u32 2147483648, %v442_v44  ;;  %vm448_vm14 = vweird.f32 %v442_v44  ;;  %v452_v50 = vand.u32 2147483647, %v442_v44 }
 0xc7a   :  { %v455_v52 = vor.u32 1.1754944e-38, %v454_v49  ;;  %vm453_vm3 = vcmp.eq.f32.partialorder %v452_v50, 8.507059e+37 }
 0xc7e   :  { %v1400_v45 = vpop.eup %1399 }
 0xc7f   :  { %v444_v46 = vmul.f32 %v1400_v45, %v442_v44  ;;  %vm449_vm13 = vweird.f32 %v1400_v45 }
 0xc80   :  { %vm450_vm2 = vmor %vm448_vm14, %vm449_vm13  ;;  %vm782_vm14 = vcmask 130048  }
 0xc81   :  { %v445_v47 = vsub.f32 1.0, %v444_v46 }
 0xc83   :  { %v446_v48 = vmul.f32 %v1400_v45, %v445_v47  ;;  %v1682_v47 = vld [vmem:[%s1888_s2 + $0x20] sm:$0x1] }
 0xc84   :  { %1298 = vmatmul.msk.f32.vlgmr.msra.gmra.mxu3 %vm72_vm6, %v1682_v47 }
 0xc85   :  { %v447_v43 = vadd.f32 %v1400_v45, %v446_v48  ;;  %v1703_v48 = vld [vmem:[%s1887_s1 + $0xc8] sm:$0xff] }
 0xc87   :  { %v451_v51 = vsel %vm450_vm2, %v1400_v45, %v447_v43  ;;  %v1710_v43 = vld [vmem:[%s1887_s1 + $0xc0] sm:$0xff] }
 0xc88   :  { %v456_v54 = vsel %vm453_vm3, %v455_v52, %v451_v51 }
 0xc89   :  { %v462_v56 = vmul.f32 %v460_v20, %v456_v54 }
 0xce6   :  { %v465_v53 = vpop.permute.xlu1 %464 }
 0xce7   :  { %v467_v55 = vmul.f32 %v465_v53, %v456_v54 }
 0xce9   :  { %469 = vrot.lane.b32.xlu2 %v467_v55, %s1468_s12 }
 0xd43   :  { %v470_v57 = vpop.permute.xlu2 %469 }
 0xd44   :  { %v472_v58 = vadd.f32 %v470_v57, %v462_v56 }
 0xd46   :  { %1401 = vtanh.f32 %v472_v58  ;;  %v530_v22 = vrot.slane %v472_v58, 6 }
 0xd4c   :  { %v1402_v59 = vpop.eup %1401 }
 0xd4d   :  { %475 = vrot.lane.b32.xlu0 %v1402_v59, %s1467_s11 }
 0xdbf   :  { %v476_v60 = vpop.permute.xlu0 %475 }
 0xdc0   :  { %v478_v61 = vmul.f32 %v476_v60, %v456_v54 }
 0xdc2   :  { %v480_v62 = vrot.slane %v478_v61, 2  ;;  %v625_v29 = vsel %vm619_vm15, %v1622_v35, %v478_v61  ;;  %v1329_v35 = vpack.i.bf16 %v1655_v34, %v1650_v33 }
 0xdc4   :  { %481 = vrot.lane.b32.xlu1 %v480_v62, %s1468_s12 }
 0xe36   :  { %v482_v63 = vpop.permute.xlu1 %481 }
 0xe37   :  { %1294 = vmatmul.msk.f32.vlgmr.msra.gmra.mxu1 %vm72_vm6, %v482_v63 }
 0xeb4   :  { %v502_v0 = vpop.f32.mrf.mxu1 }
 0xeb5   :  { %v506_v1 = vrot.slane %v502_v0, 4 }
 0xeb7   :  { %v508_v2 = vadd.f32 %v506_v1, %v1616_v9 }
 0xeb9   :  { %1403 = vtanh.f32 %v508_v2  ;;  %v1295_v4 = vmul.f32 -1.442695, %v508_v2  ;;  %v1726_v2 = vld [vmem:[%s1887_s1 + $0xe1] ss:$0 sm:$0xff] }
 0xebb   :  { %1405 = vpow2.f32 %v1295_v4 }
 0xebf   :  { %v1404_v3 = vpop.eup %1403 }
 0xec0   :  { %534 = vrot.lane.b32.xlu2 %v1404_v3, %s1467_s11 }
 0xec1   :  { %v1406_v6 = vpop.eup %1405 }
 0xec2   :  { %v512_v7 = vadd.f32 1.0, %v1406_v6 }
 0xec4   :  { %1407 = vrcp.f32 %v512_v7  ;;  %v524_v15 = vand.u32 2147483648, %v512_v7  ;;  %vm518_vm5 = vweird.f32 %v512_v7  ;;  %v522_v16 = vand.u32 2147483647, %v512_v7 }
 0xec6   :  { %v525_v17 = vor.u32 1.1754944e-38, %v524_v15  ;;  %vm523_vm9 = vcmp.eq.f32.partialorder %v522_v16, 8.507059e+37  ;;  %v826_v15 = vld [vmem:[%s1887_s1 + $0x68] sm:$0xff]  ;;  %v1756_v16 = vld [vmem:[%s1887_s1 + $0xb0] sm:$0xff] }
 0xeca   :  { %v1408_v8 = vpop.eup %1407 }
 0xecb   :  { %v514_v10 = vmul.f32 %v1408_v8, %v512_v7  ;;  %vm519_vm4 = vweird.f32 %v1408_v8 }
 0xecc   :  { %vm520_vm8 = vmor %vm518_vm5, %vm519_vm4 }
 0xecd   :  { %v515_v11 = vsub.f32 1.0, %v514_v10  ;;  %v827_v10 = vld [vmem:[%s1887_s1 + $0x70] sm:$0xff] }
 0xecf   :  { %v516_v12 = vmul.f32 %v1408_v8, %v515_v11 }
 0xed1   :  { %v517_v13 = vadd.f32 %v1408_v8, %v516_v12 }
 0xed3   :  { %v521_v14 = vsel %vm520_vm8, %v1408_v8, %v517_v13  ;;  %v828_v8 = vld [vmem:[%s1887_s1 + $0x78] sm:$0xff] }
 0xed4   :  { %v526_v19 = vsel %vm523_vm9, %v525_v17, %v521_v14  ;;  %850 = vmatpush.msrb.mxu3 %v828_v8  ;;  %v1745_v13 = vld [vmem:[%s1887_s1 + $0xb8] sm:$0xff]  ;;  %v825_v14 = vld [vmem:[%s1887_s1 + $0x60] sm:$0xff]  ;;  %v1765_v17 = vld [vmem:[%s1887_s1 + $0xa8] sm:$0xff] }
 0xed5   :  { %v532_v23 = vmul.f32 %v530_v22, %v526_v19  ;;  %v829_v8 = vld [vmem:[%s1887_s1 + $0x80] sm:$0xff] }
 0xed6   :  { %851 = vmatpush.msrb.mxu3 %v827_v10 }
 0xed8   :  { %852 = vmatpush.msrb.mxu3 %v826_v15 }
 0xeda   :  { %853 = vmatpush.msrb.mxu3 %v825_v14 }
 0xedb   :  { %1304 = vmatmul.msk.f32.vlgmr.msrb.gmra.mxu3 %vm72_vm6, %v1682_v47 }
 0xedc   :  { %901 = vmatpush.msra.mxu3 %v1745_v13 }
 0xede   :  { %902 = vmatpush.msra.mxu3 %v1756_v16 }
 0xee0   :  { %903 = vmatpush.msra.mxu3 %v1765_v17 }
 0xf1a   :  { %v535_v18 = vpop.permute.xlu2 %534 }
 0xf1b   :  { %v537_v21 = vmul.f32 %v535_v18, %v526_v19  ;;  %v1780_v18 = vld [vmem:[%s1887_s1 + $0xa0] sm:$0xff] }
 0xf1c   :  { %904 = vmatpush.msra.mxu3 %v1780_v18 }
 0xf1d   :  { %539 = vrot.lane.b32.xlu0 %v537_v21, %s1468_s12 }
 0xf1e   :  { %1156 = vmatpush.msrb.mxu3 %v1745_v13 }
 0xf20   :  { %1157 = vmatpush.msrb.mxu3 %v1756_v16 }
 0xf22   :  { %1158 = vmatpush.msrb.mxu3 %v1765_v17 }
 0xf24   :  { %1159 = vmatpush.msrb.mxu3 %v1780_v18 }
 0xf8f   :  { %v540_v24 = vpop.permute.xlu0 %539 }
 0xf90   :  { %v1636_v25 = vadd.f32 %v540_v24, %v532_v23 }
 0xf92   :  { %1409 = vtanh.f32 %v1636_v25  ;;  %v600_v61 = vrot.slane %v1636_v25, 6 }
 0xf98   :  { %v1410_v26 = vpop.eup %1409 }
 0xf99   :  { %545 = vrot.lane.b32.xlu1 %v1410_v26, %s1467_s11  ;;  %v657_v26 = vpop.f32.mrf.mxu3 }
0x100b   :  { %v546_v27 = vpop.permute.xlu1 %545 }
0x100c   :  { %v548_v28 = vmul.f32 %v546_v27, %v526_v19 }
0x100e   :  { %v550_v30 = vrot.slane %v548_v28, 4  ;;  %v1643_v31 = vsel %vm621_vm1, %v625_v29, %v548_v28 }
0x1010   :  { %551 = vrot.lane.b32.xlu2 %v550_v30, %s1468_s12 }
0x106a   :  { %v552_v32 = vpop.permute.xlu2 %551 }
0x106b   :  { %1296 = vmatmul.msk.f32.vlgmr.msra.gmra.mxu2 %vm72_vm6, %v552_v32 }
0x10ee   :  { %v572_v39 = vpop.f32.mrf.mxu2 }
0x10ef   :  { %v576_v40 = vrot.slane %v572_v39, 2 }
0x10f1   :  { %v578_v41 = vadd.f32 %v576_v40, %v1616_v9  ;;  %v1689_v9 = vld [vmem:[%s1887_s1 + $0xd8] sm:$0xff] }
0x10f2   :  { %688 = vmatpush.msrb.mxu0 %v1689_v9  ;;  %1318 = vmatpush.msrb.mxu1 %v1689_v9 }
0x10f3   :  { %1411 = vtanh.f32 %v578_v41  ;;  %v1297_v44 = vmul.f32 -1.442695, %v578_v41 }
0x10f5   :  { %1413 = vpow2.f32 %v1297_v44 }
0x10f9   :  { %v1412_v42 = vpop.eup %1411 }
0x10fa   :  { %604 = vrot.lane.b32.xlu0 %v1412_v42, %s1467_s11 }
0x10fb   :  { %v1414_v45 = vpop.eup %1413 }
0x10fc   :  { %v582_v46 = vadd.f32 1.0, %v1414_v45 }
0x10fe   :  { %1415 = vrcp.f32 %v582_v46  ;;  %v594_v54 = vand.u32 2147483648, %v582_v46  ;;  %vm588_vm11 = vweird.f32 %v582_v46  ;;  %v592_v55 = vand.u32 2147483647, %v582_v46 }
0x1100   :  { %v595_v56 = vor.u32 1.1754944e-38, %v594_v54  ;;  %vm593_vm13 = vcmp.eq.f32.partialorder %v592_v55, 8.507059e+37 }
0x1102   :  { %668 = vrot.lane.b32.xlu0 %v1609_v5, %s1468_s12  ;;  %v1698_v5 = vld [vmem:[%s1887_s1 + $0xd0] sm:$0xff] }
0x1103   :  { %689 = vmatpush.msrb.mxu0 %v1698_v5  ;;  %1319 = vmatpush.msrb.mxu1 %v1698_v5 }
0x1104   :  { %v1416_v49 = vpop.eup %1415 }
0x1105   :  { %690 = vmatpush.msrb.mxu0 %v1703_v48  ;;  %1320 = vmatpush.msrb.mxu1 %v1703_v48  ;;  %v584_v50 = vmul.f32 %v1416_v49, %v582_v46  ;;  %vm589_vm10 = vweird.f32 %v1416_v49 }
0x1106   :  { %vm590_vm12 = vmor %vm588_vm11, %vm589_vm10 }
0x1107   :  { %691 = vmatpush.msrb.mxu0 %v1710_v43  ;;  %1321 = vmatpush.msrb.mxu1 %v1710_v43  ;;  %v585_v51 = vsub.f32 1.0, %v584_v50 }
0x1109   :  { %v586_v52 = vmul.f32 %v1416_v49, %v585_v51  ;;  %967 = vmatpush.msra.mxu0 %v1745_v13 }
0x110a   :  { %635 = vrot.lane.b32.xlu0 %v1682_v47, %s1469_s26 }
0x110b   :  { %v587_v53 = vadd.f32 %v1416_v49, %v586_v52  ;;  %968 = vmatpush.msra.mxu0 %v1756_v16 }
0x110d   :  { %v591_v20 = vsel %vm590_vm12, %v1416_v49, %v587_v53  ;;  %969 = vmatpush.msra.mxu0 %v1765_v17 }
0x110e   :  { %v596_v58 = vsel %vm593_vm13, %v595_v56, %v591_v20 }
0x110f   :  { %v602_v62 = vmul.f32 %v600_v61, %v596_v58  ;;  %970 = vmatpush.msra.mxu0 %v1780_v18 }
0x116c   :  { %v605_v57 = vpop.permute.xlu0 %604 }
0x116d   :  { %v607_v59 = vmul.f32 %v605_v57, %v596_v58 }
0x116f   :  { %609 = vrot.lane.b32.xlu1 %v607_v59, %s1468_s12 }
0x1174   :  { %v669_v60 = vpop.permute.xlu0 %668 }
0x1175   :  { %1299 = vmatmul.msk.f32.vlgmr.msrb.gmra.mxu0 %vm72_vm6, %v669_v60 }
0x117c   :  { %v636_v23 = vpop.permute.xlu0 %635 }
0x117d   :  { %v658_v28 = vadd.f32 %v657_v26, %v636_v23 }
0x117f   :  { %v699_v29 = vperm.slane %v658_v28, 0 }
0x11e1   :  { %v610_v63 = vpop.permute.xlu1 %609 }
0x11e2   :  { %v1719_v0 = vadd.f32 %v610_v63, %v602_v62  ;;  %v633_v63 = vld [vmem:[%s1888_s2 + $0x21] sm:$0x3] }
0x11e4   :  { %1417 = vtanh.f32 %v1719_v0 }
0x11ea   :  { %v1418_v1 = vpop.eup %1417 }
0x11eb   :  { %615 = vrot.lane.b32.xlu2 %v1418_v1, %s1467_s11 }
0x11f2   :  { %v693_v3 = vpop.f32.mrf.mxu0 }
0x11f3   :  { %v694_v4 = vadd.f32 %v1726_v2, %v693_v3  ;;  %1330 = vrot.lane.b32.xlu2 %v1329_v35, %s1469_s26 }
0x11f5   :  { %764 = vrot.lane.b32.xlu0 %v694_v4, %s1469_s26  ;;  %v700_v33 = vmul.f32 %v699_v29, %v694_v4  ;;  %v832_v4 = vld [vmem:[%s1887_s1 + $0x98] sm:$0xff] }
0x1245   :  { %v616_v6 = vpop.permute.xlu2 %615 }
0x1246   :  { %v618_v7 = vmul.f32 %v616_v6, %v596_v58  ;;  %v831_v6 = vld [vmem:[%s1887_s1 + $0x90] sm:$0xff] }
0x1248   :  { %v884_v11 = vrot.slane %v618_v7, 6  ;;  %v627_v12 = vsel %vm623_vm7, %v1643_v31, %v618_v7  ;;  %v830_v7 = vld [vmem:[%s1887_s1 + $0x88] sm:$0xff] }
0x1249   :  { %670 = vrot.lane.b32.xlu1 %v627_v12, %s1468_s12 }
0x124a   :  { %885 = vrot.lane.b32.xlu0 %v884_v11, %s1468_s12 }
0x124d   :  { %v1331_v19 = vpop.permute.xlu2 %1330 }
0x124e   :  { %v1333_v21 = vunpack.i.h.bf16 %v1331_v19  ;;  %v1332_v22 = vunpack.i.l.bf16 %v1331_v19 }
0x1250   :  { %736 = vmatpush.msra.mxu1 %v1332_v22 }
0x1251   :  { %1335 = vrot.lane.b32.xlu1 %v1334_v38, %s1469_s26 }
0x1252   :  { %737 = vmatpush.msra.mxu1 %v1333_v21 }
0x1267   :  { %v765_v24 = vpop.permute.xlu0 %764 }
0x12bb   :  { %v671_v25 = vpop.permute.xlu1 %670 }
0x12bc   :  { %v886_v27 = vpop.permute.xlu0 %885  ;;  %1300 = vmatmul.msk.f32.vlgmr.msrb.gmra.mxu1 %vm72_vm6, %v671_v25 }
0x12bd   :  { %1306 = vmatmul.msk.f32.vlgmr.msra.gmra.mxu3 %vm72_vm6, %v886_v27 }
0x12c3   :  { %v1336_v30 = vpop.permute.xlu1 %1335 }
0x12c4   :  { %v1338_v31 = vunpack.i.h.bf16 %v1336_v30  ;;  %v1337_v32 = vunpack.i.l.bf16 %v1336_v30 }
0x12c6   :  { %738 = vmatpush.msra.mxu1 %v1337_v32 }
0x12c8   :  { %739 = vmatpush.msra.mxu1 %v1338_v31 }
0x12c9   :  { %1301 = vmatmul.msk.f32.vlgmr.msra.gmra.mxu1 %vm72_vm6, %v700_v33 }
0x12ca   :  { %1030 = vmatpush.msrb.mxu1 %v1745_v13 }
0x12cc   :  { %1031 = vmatpush.msrb.mxu1 %v1756_v16 }
0x12ce   :  { %1032 = vmatpush.msrb.mxu1 %v1765_v17 }
0x12d0   :  { %1033 = vmatpush.msrb.mxu1 %v1780_v18 }
0x1339   :  { %v696_v34 = vpop.f32.mrf.mxu1 }
0x133a   :  { %v697_v35 = vadd.f32 %v1726_v2, %v696_v34 }
0x133c   :  { %v701_v36 = vmul.f32 %v699_v29, %v697_v35  ;;  %766 = vrot.lane.b32.xlu2 %v697_v35, %s1469_s26 }
0x133e   :  { %1302 = vmatmul.msk.f32.gmra.mxu1 %vm72_vm6, %v701_v36 }
0x1346   :  { %v741_v37 = vpop.f32.mrf.mxu1 }
0x1347   :  { %v747_v39 = vsel %vm72_vm6, %v741_v37, -inf }
0x1396   :  { %v767_v56 = vpop.permute.xlu2 %766 }
0x13bb   :  { %v744_v38 = vpop.f32.mrf.mxu1 }
0x13bc   :  { %v748_v40 = vsel %vm72_vm6, %v744_v38, -inf }
0x13bd   :  { %v749_v41 = vmax.f32 %v747_v39, %v748_v40 }
0x13bf   :  { %v750_v42 = vrot.slane %v749_v41, 4 }
0x13c1   :  { %v751_v44 = vmax.f32 %v749_v41, %v750_v42 }
0x13c3   :  { %v752_v45 = vrot.slane %v751_v44, 2 }
0x13c5   :  { %v753_v46 = vmax.f32 %v751_v44, %v752_v45 }
0x13c7   :  { %v754_v47 = vrot.slane %v753_v46, 1 }
0x13c9   :  { %v755_v49 = vmax.f32 %v753_v46, %v754_v47 }
0x13cb   :  { %v756_v50 = vsub.f32 %v741_v37, %v755_v49  ;;  %v757_v51 = vsub.f32 %v744_v38, %v755_v49  ;;  %v931_v49 = vrot.slane %v1719_v0, 6 }
0x13cd   :  { %v758_v52 = vmul.f32 1.442695, %v756_v50  ;;  %v760_v53 = vmul.f32 1.442695, %v757_v51 }
0x13cf   :  { %1419 = vpow2.f32 %v758_v52 }
0x13d0   :  { %1421 = vpow2.f32 %v760_v53 }
0x13d5   :  { %v1420_v54 = vpop.eup %1419 }
0x13d6   :  { %v1422_v55 = vpop.eup %1421  ;;  %v770_v62 = vmul.f32 %v1420_v54, %v765_v24 }
0x13d7   :  { %v1339_v20 = vpack.i.bf16 %v1420_v54, %v1422_v55  ;;  %v771_v60 = vmul.f32 %v1422_v55, %v767_v56 }
0x13d9   :  { %1340 = vrot.lane.b32.xlu1 %v1339_v20, %s1468_s12 }
0x144b   :  { %v1341_v57 = vpop.permute.xlu1 %1340 }
0x144c   :  { %v1343_v58 = vunpack.i.h.bf16 %v1341_v57  ;;  %v1342_v59 = vunpack.i.l.bf16 %v1341_v57 }
0x144e   :  { %v781_v61 = vsel %vm72_vm6, %v771_v60, %v1342_v59  ;;  %v780_v1 = vsel %vm72_vm6, %v770_v62, %v1343_v58 }
0x144f   :  { %800 = vmatpush.msrb.mxu2 %v781_v61 }
0x1451   :  { %801 = vmatpush.msrb.mxu2 %v780_v1 }
0x1452   :  { %1303 = vmatmul.msk.f32.vlgmr.msrb.gmra.mxu2 %vm782_vm14, %v633_v63 }
0x1453   :  { %873 = vmatpush.msra.mxu2 %v832_v4 }
0x1455   :  { %874 = vmatpush.msra.mxu2 %v831_v6 }
0x1457   :  { %875 = vmatpush.msra.mxu2 %v830_v7 }
0x1459   :  { %876 = vmatpush.msra.mxu2 %v829_v8 }
0x145b   :  { %1093 = vmatpush.msrb.mxu2 %v1745_v13 }
0x145d   :  { %1094 = vmatpush.msrb.mxu2 %v1756_v16 }
0x145f   :  { %1095 = vmatpush.msrb.mxu2 %v1765_v17  ;;  %v837_v17 = vld [vmem:[%s1887_s1 + $0xe0] sm:$0x1] }
0x1461   :  { %1096 = vmatpush.msrb.mxu2 %v1780_v18  ;;  %v855_v18 = vpop.f32.mrf.mxu3 }
0x1462   :  { %v856_v25 = vadd.f32 %v855_v18, %v837_v17 }
0x1464   :  { %v881_v26 = vperm.slane %v856_v25, 0 }
0x1469   :  { %v906_v29 = vpop.f32.mrf.mxu3 }
0x14d5   :  { %v803_v3 = vpop.f32.mrf.mxu2 }
0x14d6   :  { %807 = vrot.lane.b32.xlu2 %v803_v3, %s1469_s26 }
0x1530   :  { %v808_v10 = vpop.permute.xlu2 %807 }
0x1531   :  { %1423 = vrcp.f32 %v808_v10  ;;  %v821_v14 = vand.u32 2147483648, %v808_v10  ;;  %v819_v21 = vand.u32 2147483647, %v808_v10  ;;  %vm815_vm3 = vweird.f32 %v808_v10 }
0x1533   :  { %v822_v23 = vor.u32 1.1754944e-38, %v821_v14  ;;  %vm820_vm5 = vcmp.eq.f32.partialorder %v819_v21, 8.507059e+37 }
0x1537   :  { %v1424_v11 = vpop.eup %1423 }
0x1538   :  { %v811_v12 = vmul.f32 %v1424_v11, %v808_v10  ;;  %vm816_vm2 = vweird.f32 %v1424_v11 }
0x1539   :  { %vm817_vm4 = vmor %vm815_vm3, %vm816_vm2 }
0x153a   :  { %v812_v15 = vsub.f32 1.0, %v811_v12 }
0x153c   :  { %v813_v19 = vmul.f32 %v1424_v11, %v812_v15 }
0x153e   :  { %v814_v22 = vadd.f32 %v1424_v11, %v813_v19 }
0x1540   :  { %v818_v13 = vsel %vm817_vm4, %v1424_v11, %v814_v22 }
0x1541   :  { %v823_v16 = vsel %vm820_vm5, %v822_v23, %v818_v13 }
0x1542   :  { %v824_v24 = vmul.f32 %v823_v16, %v803_v3 }
0x1544   :  { %1305 = vmatmul.msk.f32.vlgmr.msra.gmra.mxu2 %vm72_vm6, %v824_v24 }
0x15c7   :  { %v878_v27 = vpop.f32.mrf.mxu2 }
0x15c8   :  { %v1827_v28 = vadd.f32 %v881_v26, %v878_v27 }
0x15ca   :  { %v909_v30 = vadd.f32 %v906_v29, %v1827_v28 }
0x15cc   :  { %1425 = vtanh.f32 %v909_v30  ;;  %v1307_v32 = vmul.f32 -1.442695, %v909_v30 }
0x15ce   :  { %1427 = vpow2.f32 %v1307_v32 }
0x15d2   :  { %v1426_v31 = vpop.eup %1425 }
0x15d3   :  { %935 = vrot.lane.b32.xlu1 %v1426_v31, %s1467_s11 }
0x15d4   :  { %v1428_v33 = vpop.eup %1427 }
0x15d5   :  { %v913_v34 = vadd.f32 1.0, %v1428_v33 }
0x15d7   :  { %1429 = vrcp.f32 %v913_v34  ;;  %v925_v40 = vand.u32 2147483648, %v913_v34  ;;  %vm919_vm9 = vweird.f32 %v913_v34  ;;  %v923_v41 = vand.u32 2147483647, %v913_v34 }
0x15d9   :  { %v926_v44 = vor.u32 1.1754944e-38, %v925_v40  ;;  %vm924_vm11 = vcmp.eq.f32.partialorder %v923_v41, 8.507059e+37 }
0x15dd   :  { %v1430_v35 = vpop.eup %1429 }
0x15de   :  { %v915_v36 = vmul.f32 %v1430_v35, %v913_v34  ;;  %vm920_vm8 = vweird.f32 %v1430_v35 }
0x15df   :  { %vm921_vm10 = vmor %vm919_vm9, %vm920_vm8 }
0x15e0   :  { %v916_v37 = vsub.f32 1.0, %v915_v36 }
0x15e2   :  { %v917_v38 = vmul.f32 %v1430_v35, %v916_v37 }
0x15e4   :  { %v918_v39 = vadd.f32 %v1430_v35, %v917_v38 }
0x15e6   :  { %v922_v42 = vsel %vm921_vm10, %v1430_v35, %v918_v39 }
0x15e7   :  { %v927_v46 = vsel %vm924_vm11, %v926_v44, %v922_v42 }
0x15e8   :  { %v933_v50 = vmul.f32 %v931_v49, %v927_v46 }
0x1645   :  { %v936_v45 = vpop.permute.xlu1 %935 }
0x1646   :  { %v938_v47 = vmul.f32 %v936_v45, %v927_v46 }
0x1648   :  { %940 = vrot.lane.b32.xlu2 %v938_v47, %s1468_s12 }
0x16a2   :  { %v941_v51 = vpop.permute.xlu2 %940 }
0x16a3   :  { %v943_v52 = vadd.f32 %v941_v51, %v933_v50 }
0x16a5   :  { %1431 = vtanh.f32 %v943_v52 }
0x16ab   :  { %v1432_v53 = vpop.eup %1431 }
0x16ac   :  { %946 = vrot.lane.b32.xlu0 %v1432_v53, %s1467_s11 }
0x171e   :  { %v947_v54 = vpop.permute.xlu0 %946 }
0x171f   :  { %v1834_v55 = vmul.f32 %v947_v54, %v927_v46 }
0x1721   :  { %951 = vrot.lane.b32.xlu1 %v1834_v55, %s1468_s12 }
0x1793   :  { %v952_v20 = vpop.permute.xlu1 %951 }
0x1794   :  { %1308 = vmatmul.msk.f32.vlgmr.msra.gmra.mxu0 %vm72_vm6, %v952_v20 }
0x1811   :  { %v972_v56 = vpop.f32.mrf.mxu0 }
0x1812   :  { %v975_v57 = vadd.f32 %v972_v56, %v1827_v28 }
0x1814   :  { %1433 = vtanh.f32 %v975_v57  ;;  %v1309_v58 = vmul.f32 -1.442695, %v975_v57 }
0x1816   :  { %1435 = vpow2.f32 %v1309_v58 }
0x181a   :  { %v1434_v0 = vpop.eup %1433 }
0x181b   :  { %998 = vrot.lane.b32.xlu2 %v1434_v0, %s1467_s11 }
0x181c   :  { %v1436_v59 = vpop.eup %1435 }
0x181d   :  { %v979_v60 = vadd.f32 1.0, %v1436_v59 }
0x181f   :  { %1437 = vrcp.f32 %v979_v60  ;;  %v991_v4 = vand.u32 2147483648, %v979_v60  ;;  %vm985_vm13 = vweird.f32 %v979_v60  ;;  %v989_v6 = vand.u32 2147483647, %v979_v60 }
0x1821   :  { %v992_v8 = vor.u32 1.1754944e-38, %v991_v4  ;;  %vm990_vm2 = vcmp.eq.f32.partialorder %v989_v6, 8.507059e+37 }
0x1825   :  { %v1438_v61 = vpop.eup %1437 }
0x1826   :  { %v981_v62 = vmul.f32 %v1438_v61, %v979_v60  ;;  %vm986_vm12 = vweird.f32 %v1438_v61 }
0x1827   :  { %vm987_vm14 = vmor %vm985_vm13, %vm986_vm12 }
0x1828   :  { %v982_v63 = vsub.f32 1.0, %v981_v62 }
0x182a   :  { %v983_v1 = vmul.f32 %v1438_v61, %v982_v63 }
0x182c   :  { %v984_v3 = vadd.f32 %v1438_v61, %v983_v1 }
0x182e   :  { %v988_v7 = vsel %vm987_vm14, %v1438_v61, %v984_v3 }
0x182f   :  { %v993_v11 = vsel %vm990_vm2, %v992_v8, %v988_v7  ;;  %vm1273_vm2 = vcmask 519168  }
0x1830   :  { %v996_v15 = vmul.f32 %v993_v11, %v943_v52 }
0x1875   :  { %v999_v10 = vpop.permute.xlu2 %998 }
0x1876   :  { %v1001_v12 = vmul.f32 %v999_v10, %v993_v11 }
0x1878   :  { %1003 = vrot.lane.b32.xlu0 %v1001_v12, %s1468_s12 }
0x18ea   :  { %v1004_v14 = vpop.permute.xlu0 %1003 }
0x18eb   :  { %v1006_v19 = vadd.f32 %v1004_v14, %v996_v15 }
0x18ed   :  { %1439 = vtanh.f32 %v1006_v19 }
0x18f3   :  { %v1440_v21 = vpop.eup %1439 }
0x18f4   :  { %1009 = vrot.lane.b32.xlu1 %v1440_v21, %s1467_s11 }
0x1966   :  { %v1010_v22 = vpop.permute.xlu1 %1009 }
0x1967   :  { %v1012_v23 = vmul.f32 %v1010_v22, %v993_v11 }
0x1969   :  { %1014 = vrot.lane.b32.xlu2 %v1012_v23, %s1468_s12  ;;  %v1202_v45 = vrot.slane %v1012_v23, 6 }
0x196b   :  { %v1208_v50 = vsel %vm619_vm15, %v1834_v55, %v1202_v45 }
0x19c3   :  { %v1015_v13 = vpop.permute.xlu2 %1014 }
0x19c4   :  { %1310 = vmatmul.msk.f32.vlgmr.msrb.gmra.mxu1 %vm72_vm6, %v1015_v13 }
0x1a41   :  { %v1035_v16 = vpop.f32.mrf.mxu1 }
0x1a42   :  { %v1038_v24 = vadd.f32 %v1035_v16, %v1827_v28 }
0x1a44   :  { %1441 = vtanh.f32 %v1038_v24  ;;  %v1311_v18 = vmul.f32 -1.442695, %v1038_v24 }
0x1a46   :  { %1443 = vpow2.f32 %v1311_v18 }
0x1a4a   :  { %v1442_v17 = vpop.eup %1441 }
0x1a4b   :  { %1061 = vrot.lane.b32.xlu0 %v1442_v17, %s1467_s11 }
0x1a4c   :  { %v1444_v25 = vpop.eup %1443 }
0x1a4d   :  { %v1042_v26 = vadd.f32 1.0, %v1444_v25 }
0x1a4f   :  { %1445 = vrcp.f32 %v1042_v26  ;;  %v1054_v33 = vand.u32 2147483648, %v1042_v26  ;;  %vm1048_vm4 = vweird.f32 %v1042_v26  ;;  %v1052_v34 = vand.u32 2147483647, %v1042_v26 }
0x1a51   :  { %v1055_v36 = vor.u32 1.1754944e-38, %v1054_v33  ;;  %vm1053_vm8 = vcmp.eq.f32.partialorder %v1052_v34, 8.507059e+37 }
0x1a55   :  { %v1446_v27 = vpop.eup %1445 }
0x1a56   :  { %v1044_v29 = vmul.f32 %v1446_v27, %v1042_v26  ;;  %vm1049_vm3 = vweird.f32 %v1446_v27 }
0x1a57   :  { %vm1050_vm5 = vmor %vm1048_vm4, %vm1049_vm3 }
0x1a58   :  { %v1045_v30 = vsub.f32 1.0, %v1044_v29 }
0x1a5a   :  { %v1046_v31 = vmul.f32 %v1446_v27, %v1045_v30 }
0x1a5c   :  { %v1047_v32 = vadd.f32 %v1446_v27, %v1046_v31 }
0x1a5e   :  { %v1051_v35 = vsel %vm1050_vm5, %v1446_v27, %v1047_v32 }
0x1a5f   :  { %v1056_v38 = vsel %vm1053_vm8, %v1055_v36, %v1051_v35 }
0x1a60   :  { %v1059_v40 = vmul.f32 %v1056_v38, %v1006_v19 }
0x1abd   :  { %v1062_v37 = vpop.permute.xlu0 %1061 }
0x1abe   :  { %v1064_v39 = vmul.f32 %v1062_v37, %v1056_v38  ;;  %v1349_v37 = vpack.i.bf16 %v1710_v43, %v1703_v48 }
0x1ac0   :  { %1066 = vrot.lane.b32.xlu1 %v1064_v39, %s1468_s12 }
0x1b32   :  { %v1067_v41 = vpop.permute.xlu1 %1066 }
0x1b33   :  { %v1069_v42 = vadd.f32 %v1067_v41, %v1059_v40 }
0x1b35   :  { %1447 = vtanh.f32 %v1069_v42 }
0x1b3b   :  { %v1448_v44 = vpop.eup %1447 }
0x1b3c   :  { %1072 = vrot.lane.b32.xlu2 %v1448_v44, %s1467_s11 }
0x1b96   :  { %v1073_v46 = vpop.permute.xlu2 %1072 }
0x1b97   :  { %v1075_v47 = vmul.f32 %v1073_v46, %v1056_v38  ;;  %v1344_v38 = vpack.i.bf16 %v1698_v5, %v1689_v9 }
0x1b99   :  { %v1204_v49 = vrot.slane %v1075_v47, 4  ;;  %1077 = vrot.lane.b32.xlu0 %v1075_v47, %s1468_s12 }
0x1b9b   :  { %v1209_v51 = vsel %vm621_vm1, %v1208_v50, %v1204_v49 }
0x1c0b   :  { %v1078_v52 = vpop.permute.xlu0 %1077 }
0x1c0c   :  { %1312 = vmatmul.msk.f32.vlgmr.msrb.gmra.mxu2 %vm72_vm6, %v1078_v52 }
0x1c8f   :  { %v1098_v53 = vpop.f32.mrf.mxu2 }
0x1c90   :  { %v1101_v54 = vadd.f32 %v1098_v53, %v1827_v28 }
0x1c92   :  { %1449 = vtanh.f32 %v1101_v54  ;;  %v1313_v56 = vmul.f32 -1.442695, %v1101_v54 }
0x1c94   :  { %1451 = vpow2.f32 %v1313_v56 }
0x1c98   :  { %v1450_v20 = vpop.eup %1449 }
0x1c99   :  { %1124 = vrot.lane.b32.xlu1 %v1450_v20, %s1467_s11 }
0x1c9a   :  { %v1452_v57 = vpop.eup %1451 }
0x1c9b   :  { %v1105_v0 = vadd.f32 1.0, %v1452_v57 }
0x1c9d   :  { %1453 = vrcp.f32 %v1105_v0  ;;  %v1117_v62 = vand.u32 2147483648, %v1105_v0  ;;  %vm1111_vm9 = vweird.f32 %v1105_v0  ;;  %v1115_v63 = vand.u32 2147483647, %v1105_v0 }
0x1c9f   :  { %v1118_v3 = vor.u32 1.1754944e-38, %v1117_v62  ;;  %vm1116_vm11 = vcmp.eq.f32.partialorder %v1115_v63, 8.507059e+37 }
0x1ca3   :  { %v1454_v58 = vpop.eup %1453 }
0x1ca4   :  { %v1107_v59 = vmul.f32 %v1454_v58, %v1105_v0  ;;  %vm1112_vm1 = vweird.f32 %v1454_v58 }
0x1ca5   :  { %vm1113_vm10 = vmor %vm1111_vm9, %vm1112_vm1 }
0x1ca6   :  { %v1108_v55 = vsub.f32 1.0, %v1107_v59 }
0x1ca8   :  { %v1109_v60 = vmul.f32 %v1454_v58, %v1108_v55 }
0x1caa   :  { %v1110_v61 = vadd.f32 %v1454_v58, %v1109_v60 }
0x1cac   :  { %v1114_v1 = vsel %vm1113_vm10, %v1454_v58, %v1110_v61 }
0x1cad   :  { %v1119_v6 = vsel %vm1116_vm11, %v1118_v3, %v1114_v1 }
0x1cae   :  { %v1122_v8 = vmul.f32 %v1119_v6, %v1069_v42 }
0x1d0b   :  { %v1125_v4 = vpop.permute.xlu1 %1124 }
0x1d0c   :  { %v1127_v7 = vmul.f32 %v1125_v4, %v1119_v6 }
0x1d0e   :  { %1129 = vrot.lane.b32.xlu2 %v1127_v7, %s1468_s12 }
0x1d68   :  { %v1130_v10 = vpop.permute.xlu2 %1129 }
0x1d69   :  { %v1132_v11 = vadd.f32 %v1130_v10, %v1122_v8 }
0x1d6b   :  { %1455 = vtanh.f32 %v1132_v11 }
0x1d71   :  { %v1456_v12 = vpop.eup %1455 }
0x1d72   :  { %1135 = vrot.lane.b32.xlu0 %v1456_v12, %s1467_s11 }
0x1de4   :  { %v1136_v15 = vpop.permute.xlu0 %1135 }
0x1de5   :  { %v1138_v14 = vmul.f32 %v1136_v15, %v1119_v6 }
0x1de7   :  { %v1206_v19 = vrot.slane %v1138_v14, 2  ;;  %1140 = vrot.lane.b32.xlu1 %v1138_v14, %s1468_s12 }
0x1de9   :  { %v1210_v21 = vsel %vm623_vm7, %v1209_v51, %v1206_v19 }
0x1e59   :  { %v1141_v22 = vpop.permute.xlu1 %1140 }
0x1e5a   :  { %1314 = vmatmul.msk.f32.vlgmr.msrb.gmra.mxu3 %vm72_vm6, %v1141_v22 }
0x1edd   :  { %v1161_v23 = vpop.f32.mrf.mxu3 }
0x1ede   :  { %v1164_v13 = vadd.f32 %v1161_v23, %v1827_v28 }
0x1ee0   :  { %1457 = vtanh.f32 %v1164_v13  ;;  %v1315_v24 = vmul.f32 -1.442695, %v1164_v13 }
0x1ee2   :  { %1459 = vpow2.f32 %v1315_v24 }
0x1ee6   :  { %v1458_v16 = vpop.eup %1457 }
0x1ee7   :  { %1187 = vrot.lane.b32.xlu2 %v1458_v16, %s1467_s11 }
0x1ee8   :  { %v1460_v17 = vpop.eup %1459 }
0x1ee9   :  { %v1168_v18 = vadd.f32 1.0, %v1460_v17 }
0x1eeb   :  { %1461 = vrcp.f32 %v1168_v18  ;;  %v1180_v31 = vand.u32 2147483648, %v1168_v18  ;;  %vm1174_vm12 = vweird.f32 %v1168_v18  ;;  %v1178_v32 = vand.u32 2147483647, %v1168_v18 }
0x1eed   :  { %v1181_v33 = vor.u32 1.1754944e-38, %v1180_v31  ;;  %vm1179_vm14 = vcmp.eq.f32.partialorder %v1178_v32, 8.507059e+37 }
0x1eef   :  { %1345 = vrot.lane.b32.xlu2 %v1344_v38, %s1467_s11 }
0x1ef1   :  { %v1462_v25 = vpop.eup %1461 }
0x1ef2   :  { %v1170_v26 = vmul.f32 %v1462_v25, %v1168_v18  ;;  %vm1175_vm7 = vweird.f32 %v1462_v25 }
0x1ef3   :  { %vm1176_vm13 = vmor %vm1174_vm12, %vm1175_vm7 }
0x1ef4   :  { %v1171_v27 = vsub.f32 1.0, %v1170_v26 }
0x1ef6   :  { %v1172_v29 = vmul.f32 %v1462_v25, %v1171_v27 }
0x1ef8   :  { %v1173_v30 = vadd.f32 %v1462_v25, %v1172_v29 }
0x1efa   :  { %v1177_v28 = vsel %vm1176_vm13, %v1462_v25, %v1173_v30 }
0x1efb   :  { %v1182_v35 = vsel %vm1179_vm14, %v1181_v33, %v1177_v28 }
0x1efc   :  { %v1185_v39 = vmul.f32 %v1182_v35, %v1132_v11 }
0x1f41   :  { %v1188_v34 = vpop.permute.xlu2 %1187 }
0x1f42   :  { %v1190_v36 = vmul.f32 %v1188_v34, %v1182_v35 }
0x1f44   :  { %1192 = vrot.lane.b32.xlu0 %v1190_v36, %s1468_s12 }
0x1f49   :  { %v1346_v48 = vpop.permute.xlu2 %1345 }
0x1f4a   :  { %v1348_v43 = vunpack.i.h.bf16 %v1346_v48  ;;  %v1347_v44 = vunpack.i.l.bf16 %v1346_v48 }
0x1f4c   :  { %1350 = vrot.lane.b32.xlu0 %v1349_v37, %s1467_s11  ;;  %1253 = vmatpush.msrb.mxu0 %v1347_v44 }
0x1f4e   :  { %1254 = vmatpush.msrb.mxu0 %v1348_v43 }
0x1f54   :  { %1234 = vrot.lane.b32.xlu0 %v1726_v2, %s1467_s11 }
0x1fb6   :  { %v1193_v40 = vpop.permute.xlu0 %1192 }
0x1fb7   :  { %v1195_v41 = vadd.f32 %v1193_v40, %v1185_v39 }
0x1fb9   :  { %1463 = vtanh.f32 %v1195_v41 }
0x1fbe   :  { %v1351_v9 = vpop.permute.xlu0 %1350 }
0x1fbf   :  { %v1464_v42 = vpop.eup %1463  ;;  %v1353_v5 = vunpack.i.h.bf16 %v1351_v9  ;;  %v1352_v45 = vunpack.i.l.bf16 %v1351_v9 }
0x1fc0   :  { %1198 = vrot.lane.b32.xlu1 %v1464_v42, %s1467_s11 }
0x1fc1   :  { %1255 = vmatpush.msrb.mxu0 %v1352_v45 }
0x1fc3   :  { %1256 = vmatpush.msrb.mxu0 %v1353_v5 }
0x1fc6   :  { %v1235_v50 = vpop.permute.xlu0 %1234 }
0x1fc8   :  { %1213 = vrot.lane.b32.xlu1 %v1210_v21, %s1468_s12 }
0x2032   :  { %v1199_v2 = vpop.permute.xlu1 %1198 }
0x2033   :  { %v1201_v46 = vmul.f32 %v1199_v2, %v1182_v35 }
0x2035   :  { %1215 = vrot.lane.b32.xlu2 %v1201_v46, %s1468_s12 }
0x203a   :  { %v1214_v47 = vpop.permute.xlu1 %1213 }
0x203b   :  { %1316 = vmatmul.msk.f32.vlgmr.msrb.gmra.mxu0 %vm72_vm6, %v1214_v47 }
0x208f   :  { %v1216_v49 = vpop.permute.xlu2 %1215 }
0x2090   :  { %1317 = vmatmul.msk.f32.gmra.mxu0 %vm72_vm6, %v1216_v49 }
0x20b8   :  { %v1258_v51 = vpop.f32.mrf.mxu0 }
0x20b9   :  { %v1259_v52 = vadd.f32 %v1258_v51, %v1235_v50 }
0x20bb   :  { %v1266_v53 = vrot.slane %v1259_v52, 6 }
0x20bd   :  { %v1271_v54 = vsel %vm619_vm15, 0.0, %v1266_v53 }
0x20be   :  { %1272 = vst.msk [vmem:[%s1889_s3] sm:$0xff] %vm38_vm0, %v1271_v54 }
0x210d   :  { %v1261_v20 = vpop.f32.mrf.mxu0 }
0x210e   :  { %v1262_v56 = vadd.f32 %v1261_v20, %v1235_v50 }
0x2110   :  { %v1267_v57 = vrot.slane %v1262_v56, 6 }
0x2112   :  { %v1268_v0 = vsel %vm619_vm15, %v1266_v53, %v1267_v57 }
0x2113   :  { %1274 = vst.msk [vmem:[%s1889_s3 + $0x8] sm:$0xf] %vm1273_vm2, %v1268_v0 }

</bundles_post_ra>
